<compile_context>
chip_gen: v7x
topology: tpu7x:2x2x1
jax: 0.10.0
libtpu: 0.0.40
codegen_flags: <defaults>
</compile_context>

<pallas_src>
import math

import jax
import jax.numpy as jnp
from jax import lax
from jax.experimental import pallas as pl
from jax.experimental.pallas import tpu as pltpu

# ------------------------- model sizes (small, consistent with the module) ----------
B = 2          # batch
S = 16         # seq len == max_seq_len
D = 128        # model_dim (original default 300)
FF = 256       # feed-forward dim (original default 1024)
OUT = 2        # output_dim
VOCAB = 50     # vocab size for the frozen embedding table
EPS = 1e-5     # nn.LayerNorm default eps
LANES = 128    # lane-padded key axis / head width (keeps every store 128-lane dense)
assert D == LANES  # emb / pe / mask share one packed (3, B*S, 128) input buffer

# Row offsets inside the packed small-parameter buffer `pvec` (every row is (1, D) f32).
PV_G1, PV_BN1, PV_G2, PV_BN2 = 0, 2, 4, 6
PV_BO, PV_B12, PV_BC, PV_BQKV = 8, 10, 12, 13
PV_ROWS = 19   # g1(2) bn1(2) g2(2) bn2(2) bo(2) b12(2) bc(1) [bq0 bk0 bv0 bq1 bk1 bv1](6)


def transformer_kernel(xin_ref, pv_ref, wqkv_ref, wo_ref, w12_ref, wc_ref,
                       logits_ref, nw_ref):
    f32 = jnp.float32
    bf16 = jnp.bfloat16

    def prow(i):                         # static row -> (1, D) f32
        return pv_ref[pl.ds(i, 1), :]

    # ---- PositionalEncoder: sqrt(model_dim) * emb + pe (VPU math stays f32) ----------
    x = f32(math.sqrt(D)) * xin_ref[0] + xin_ref[1]          # (B*S, D) f32
    neg_mask = xin_ref[2] < 0.5                              # (B*S, LANES): block-diag+pad mask

    def layernorm(v, g, b):
        mu = jnp.mean(v, axis=-1, keepdims=True)
        var = jnp.mean((v - mu) ** 2, axis=-1, keepdims=True)
        return (v - mu) * lax.rsqrt(var + EPS) * g + b

    def wdot(a_f32, w_bf16):             # bf16 MXU inputs, f32 accumulation
        return jnp.dot(a_f32.astype(bf16), w_bf16, preferred_element_type=f32)

    zpad = jnp.zeros((LANES - B * S, D), bf16)               # built once, bf16 (24 KB)

    # Dropout layers are identity (eval-mode forward).
    for blk in range(2):                                     # static 2-block unroll
        # ---- Attention: both batch elements in ONE scores/AV matmul pair -------------
        xn = layernorm(x, prow(PV_G1 + blk), prow(PV_BN1 + blk))
        qkv = wdot(xn, wqkv_ref[blk])                        # (B*S, 3D) fused Q/K/V matmul
        q = qkv[:, 0:D] + prow(PV_BQKV + 3 * blk + 0)        # lane-aligned column slices
        k = qkv[:, D:2 * D] + prow(PV_BQKV + 3 * blk + 1)
        v = qkv[:, 2 * D:3 * D] + prow(PV_BQKV + 3 * blk + 2)

        kpad = jnp.concatenate([k.astype(bf16), zpad], axis=0)    # (LANES, D) bf16
        vpad = jnp.concatenate([v.astype(bf16), zpad], axis=0)    # (LANES, D) bf16

        w = lax.dot_general(q.astype(bf16), kpad, (((1,), (1,)), ((), ())),
                            preferred_element_type=f32) * f32(1.0 / math.sqrt(D))
        w = jnp.where(neg_mask, f32(-1e9), w)                # cross-batch + padded keys -> -1e9
        w = w - jnp.max(w, axis=-1, keepdims=True)
        ew = jnp.exp(w)                                      # masked cols underflow to exactly 0
        nw = ew * pl.reciprocal(jnp.sum(ew, axis=-1, keepdims=True), approx=True)
        nw_ref[blk] = nw                                     # (B*S, LANES) lane-dense store

        att = jnp.dot(nw.astype(bf16), vpad, preferred_element_type=f32)   # (B*S, D)
        att = wdot(att, wo_ref[blk]) + prow(PV_BO + blk)
        x = x + att                                          # residual 1

        # ---- FeedForward: linear-only (W1@W2 pre-folded in the wrapper) ---------------
        xn2 = layernorm(x, prow(PV_G2 + blk), prow(PV_BN2 + blk))
        x = x + (wdot(xn2, w12_ref[blk]) + prow(PV_B12 + blk))    # residual 2

    # ---- ClassificationHead on the vreg-aligned 8-row blocks holding token 0 ----------
    xh = jnp.concatenate([x[b * S:b * S + 8, :] for b in range(B)], axis=0)   # (8*B, D)
    logits_ref[...] = wdot(xh, wc_ref[...]) + prow(PV_BC)    # (8*B, LANES) lane-dense store


def make_positional_encoding(seq_len, model_dim):
    # Matches the PyTorch loop: pe[pos, i] = sin(pos / 10000**(2*i/D)),
    #                           pe[pos, i+1] = cos(pos / 10000**(2*(i+1)/D))
    pos = jnp.arange(seq_len, dtype=jnp.float32)[:, None]
    i_even = jnp.arange(0, model_dim, 2, dtype=jnp.float32)
    pe_sin = jnp.sin(pos / (10000.0 ** (2.0 * i_even / model_dim)))
    pe_cos = jnp.cos(pos / (10000.0 ** (2.0 * (i_even + 1.0) / model_dim)))
    pe = jnp.zeros((seq_len, model_dim), jnp.float32)
    pe = pe.at[:, 0::2].set(pe_sin).at[:, 1::2].set(pe_cos)
    return pe


def init_params(key):
    keys = jax.random.split(key, 16)
    n = lambda k, shape, std=0.02: std * jax.random.normal(k, shape, jnp.float32)
    return dict(
        emb=n(keys[0], (VOCAB, D), std=1.0),
        pe=make_positional_encoding(S, D),
        g1=jnp.ones((2, D), jnp.float32), bn1=jnp.zeros((2, D), jnp.float32),
        g2=jnp.ones((2, D), jnp.float32), bn2=jnp.zeros((2, D), jnp.float32),
        wq=n(keys[1], (2, D, D)), bq=n(keys[2], (2, D)),
        wk=n(keys[3], (2, D, D)), bk=n(keys[4], (2, D)),
        wv=n(keys[5], (2, D, D)), bv=n(keys[6], (2, D)),
        wo=n(keys[7], (2, D, D)), bo=n(keys[8], (2, D)),
        w1=n(keys[9], (2, D, FF)), bf1=n(keys[10], (2, FF)),
        w2=n(keys[11], (2, FF, D)), bf2=n(keys[12], (2, D)),
        wc=n(keys[13], (D, OUT)), bc=n(keys[14], (1, OUT)),
    )


@jax.jit
def transformer_classification(ids, mask, params):
    f32, bf16 = jnp.float32, jnp.bfloat16

    # ---- plain-JAX glue: embedding gather, PE tiling, fused mask, weight packing -----
    x_emb = jnp.take(params["emb"], ids, axis=0).reshape(B * S, D)     # frozen nn.Embedding
    pe_bs = jnp.tile(params["pe"], (B, 1))                             # (B*S, D)
    maskf = mask.astype(f32)
    mask_full = jnp.zeros((B * S, LANES), f32)                         # block-diag + key padding
    for b in range(B):
        mask_full = mask_full.at[b * S:(b + 1) * S, b * S:(b + 1) * S].set(
            jnp.broadcast_to(maskf[b][None, :], (S, S)))
    xin = jnp.stack([x_emb, pe_bs, mask_full], axis=0)                 # (3, B*S, 128) f32

    # fused QKV weight; folded FF (linear-only, dropout identity at eval): W12 = W1 @ W2
    wqkv = jnp.concatenate([params["wq"], params["wk"], params["wv"]], axis=-1).astype(bf16)
    w12 = jnp.einsum("bdf,bfe->bde", params["w1"], params["w2"]).astype(bf16)   # (2, D, D)
    b12 = jnp.einsum("bf,bfe->be", params["bf1"], params["w2"]) + params["bf2"]
    wc_pad = jnp.zeros((D, LANES), f32).at[:, :OUT].set(params["wc"]).astype(bf16)
    bc_pad = jnp.zeros((1, LANES), f32).at[:, :OUT].set(params["bc"])

    # all small f32 params packed into ONE (19, 128) buffer (single DMA descriptor)
    bqkv_rows = jnp.stack([params["bq"], params["bk"], params["bv"]], axis=1).reshape(3 * B, D)
    pvec = jnp.concatenate([
        params["g1"], params["bn1"], params["g2"], params["bn2"],
        params["bo"], b12, bc_pad, bqkv_rows], axis=0)                 # (PV_ROWS, D)

    vmem_spec = pl.BlockSpec(memory_space=pltpu.MemorySpace.VMEM)
    logits_all, nw_all = pl.pallas_call(
        transformer_kernel,
        out_shape=(
            jax.ShapeDtypeStruct((8 * B, LANES), jnp.float32),         # head logits (rows 0, 8)
            jax.ShapeDtypeStruct((2, B * S, LANES), jnp.float32),      # nw for block 1 and 2
        ),
        in_specs=[vmem_spec] * 6,
        out_specs=(vmem_spec, vmem_spec),
        compiler_params=pltpu.CompilerParams(vmem_limit_bytes=32 * 1024 * 1024),
    )(xin, pvec, wqkv, params["wo"].astype(bf16), w12, wc_pad)

    logits = logits_all[0::8, :OUT]                                    # token-0 rows per batch
    # realign: batch 0 weights live in lanes 0..S-1, batch 1 weights in lanes S..2S-1
    nw1 = jnp.stack([nw_all[0, :S, :S], nw_all[0, S:, S:2 * S]], axis=0)
    nw2 = jnp.stack([nw_all[1, :S, :S], nw_all[1, S:, S:2 * S]], axis=0)
    return logits, nw1, nw2


if __name__ == "__main__":
    key = jax.random.PRNGKey(0)
    pkey, ikey = jax.random.split(key)
    params = init_params(pkey)

    ids = jax.random.randint(ikey, (B, S), minval=1, maxval=VOCAB, dtype=jnp.int32)
    # mask: 1 for real tokens, 0 for padding (second example has 4 padded positions)
    mask = jnp.ones((B, S), jnp.int32)
    mask = mask.at[1, S - 4:].set(0)
    ids = ids * mask  # padded positions use id 0, like <pad>

    logits, nw1, nw2 = transformer_classification(ids, mask, params)
    jax.block_until_ready((logits, nw1, nw2))

    assert logits.shape == (B, OUT)
    assert nw1.shape == (B, S, S) and nw2.shape == (B, S, S)
    print("KERNEL_OK")
</pallas_src>

<mosaic_0001>
module attributes {stable_mosaic.version = 11 : i64} {
  func.func @transformer_kernel(%arg0: memref<3x32x128xf32, #tpu.memory_space<vmem>>, %arg1: memref<19x128xf32, #tpu.memory_space<vmem>>, %arg2: memref<2x128x384xbf16, #tpu.memory_space<vmem>>, %arg3: memref<2x128x128xbf16, #tpu.memory_space<vmem>>, %arg4: memref<2x128x128xbf16, #tpu.memory_space<vmem>>, %arg5: memref<128x128xbf16, #tpu.memory_space<vmem>>, %arg6: memref<16x128xf32, #tpu.memory_space<vmem>>, %arg7: memref<2x32x128xf32, #tpu.memory_space<vmem>>) attributes {dimension_semantics = [], scalar_prefetch = 0 : i64, scratch_operands = 0 : i64, tpu.core_type = #tpu.core_type<tc>} {
    %c0 = arith.constant 0 : index
    %c0_0 = arith.constant 0 : index
    %c0_1 = arith.constant 0 : index
    %0 = vector.load %arg0[%c0, %c0_0, %c0_1] : memref<3x32x128xf32, #tpu.memory_space<vmem>>, vector<1x32x128xf32>
    %1 = vector.shape_cast %0 : vector<1x32x128xf32> to vector<32x128xf32>
    %cst = arith.constant 11.3137083 : f32
    %2 = vector.broadcast %cst : f32 to vector<32x128xf32>
    %3 = arith.mulf %2, %1 : vector<32x128xf32>
    %c1 = arith.constant 1 : index
    %c0_2 = arith.constant 0 : index
    %c0_3 = arith.constant 0 : index
    %4 = vector.load %arg0[%c1, %c0_2, %c0_3] : memref<3x32x128xf32, #tpu.memory_space<vmem>>, vector<1x32x128xf32>
    %5 = vector.shape_cast %4 : vector<1x32x128xf32> to vector<32x128xf32>
    %6 = arith.addf %3, %5 : vector<32x128xf32>
    %c2 = arith.constant 2 : index
    %c0_4 = arith.constant 0 : index
    %c0_5 = arith.constant 0 : index
    %7 = vector.load %arg0[%c2, %c0_4, %c0_5] : memref<3x32x128xf32, #tpu.memory_space<vmem>>, vector<1x32x128xf32>
    %8 = vector.shape_cast %7 : vector<1x32x128xf32> to vector<32x128xf32>
    %cst_6 = arith.constant 5.000000e-01 : f32
    %9 = vector.broadcast %cst_6 : f32 to vector<32x128xf32>
    %10 = arith.cmpf olt, %8, %9 : vector<32x128xf32>
    %cst_7 = arith.constant 0.000000e+00 : bf16
    %11 = vector.broadcast %cst_7 : bf16 to vector<96x128xbf16>
    %c0_8 = arith.constant 0 : index
    %c0_9 = arith.constant 0 : index
    %12 = vector.load %arg1[%c0_8, %c0_9] : memref<19x128xf32, #tpu.memory_space<vmem>>, vector<1x128xf32>
    %c2_10 = arith.constant 2 : index
    %c0_11 = arith.constant 0 : index
    %13 = vector.load %arg1[%c2_10, %c0_11] : memref<19x128xf32, #tpu.memory_space<vmem>>, vector<1x128xf32>
    %cst_12 = arith.constant dense<0.000000e+00> : vector<32xf32>
    %14 = vector.multi_reduction <add>, %6, %cst_12 [1] : vector<32x128xf32> to vector<32xf32>
    %15 = vector.shape_cast %14 : vector<32xf32> to vector<32x1xf32>
    %cst_13 = arith.constant 1.280000e+02 : f32
    %16 = vector.broadcast %cst_13 : f32 to vector<32x1xf32>
    %17 = arith.divf %15, %16 : vector<32x1xf32>
    %18 = vector.broadcast %17 : vector<32x1xf32> to vector<32x128xf32>
    %19 = arith.subf %6, %18 : vector<32x128xf32>
    %20 = arith.mulf %19, %19 : vector<32x128xf32>
    %cst_14 = arith.constant dense<0.000000e+00> : vector<32xf32>
    %21 = vector.multi_reduction <add>, %20, %cst_14 [1] : vector<32x128xf32> to vector<32xf32>
    %22 = vector.shape_cast %21 : vector<32xf32> to vector<32x1xf32>
    %cst_15 = arith.constant 1.280000e+02 : f32
    %23 = vector.broadcast %cst_15 : f32 to vector<32x1xf32>
    %24 = arith.divf %22, %23 : vector<32x1xf32>
    %25 = vector.broadcast %17 : vector<32x1xf32> to vector<32x128xf32>
    %26 = arith.subf %6, %25 : vector<32x128xf32>
    %cst_16 = arith.constant 9.99999974E-6 : f32
    %27 = vector.broadcast %cst_16 : f32 to vector<32x1xf32>
    %28 = arith.addf %24, %27 : vector<32x1xf32>
    %29 = math.rsqrt %28 : vector<32x1xf32>
    %30 = vector.broadcast %29 : vector<32x1xf32> to vector<32x128xf32>
    %31 = arith.mulf %26, %30 : vector<32x128xf32>
    %32 = vector.broadcast %12 : vector<1x128xf32> to vector<32x128xf32>
    %33 = arith.mulf %31, %32 : vector<32x128xf32>
    %34 = vector.broadcast %13 : vector<1x128xf32> to vector<32x128xf32>
    %35 = arith.addf %33, %34 : vector<32x128xf32>
    %c0_17 = arith.constant 0 : index
    %c0_18 = arith.constant 0 : index
    %c0_19 = arith.constant 0 : index
    %36 = vector.load %arg2[%c0_17, %c0_18, %c0_19] : memref<2x128x384xbf16, #tpu.memory_space<vmem>>, vector<1x128x384xbf16>
    %37 = vector.shape_cast %36 : vector<1x128x384xbf16> to vector<128x384xbf16>
    %38 = arith.truncf %35 : vector<32x128xf32> to vector<32x128xbf16>
    %cst_20 = arith.constant dense<0.000000e+00> : vector<32x384xf32>
    %39 = tpu.matmul %38, %37, %cst_20 {dimension_numbers = #tpu.dot_dimension_numbers<[1], [0], [0], [1], [0, 0, 1, 1], [], []>} : vector<32x128xbf16>, vector<128x384xbf16>, vector<32x384xf32> -> vector<32x384xf32>
    %40 = vector.extract_strided_slice %39 {offsets = [0, 0], sizes = [32, 128], strides = [1, 1]} : vector<32x384xf32> to vector<32x128xf32>
    %c13 = arith.constant 13 : index
    %c0_21 = arith.constant 0 : index
    %41 = vector.load %arg1[%c13, %c0_21] : memref<19x128xf32, #tpu.memory_space<vmem>>, vector<1x128xf32>
    %42 = vector.broadcast %41 : vector<1x128xf32> to vector<32x128xf32>
    %43 = arith.addf %40, %42 : vector<32x128xf32>
    %44 = vector.extract_strided_slice %39 {offsets = [0, 128], sizes = [32, 128], strides = [1, 1]} : vector<32x384xf32> to vector<32x128xf32>
    %c14 = arith.constant 14 : index
    %c0_22 = arith.constant 0 : index
    %45 = vector.load %arg1[%c14, %c0_22] : memref<19x128xf32, #tpu.memory_space<vmem>>, vector<1x128xf32>
    %46 = vector.broadcast %45 : vector<1x128xf32> to vector<32x128xf32>
    %47 = arith.addf %44, %46 : vector<32x128xf32>
    %48 = vector.extract_strided_slice %39 {offsets = [0, 256], sizes = [32, 128], strides = [1, 1]} : vector<32x384xf32> to vector<32x128xf32>
    %c15 = arith.constant 15 : index
    %c0_23 = arith.constant 0 : index
    %49 = vector.load %arg1[%c15, %c0_23] : memref<19x128xf32, #tpu.memory_space<vmem>>, vector<1x128xf32>
    %50 = vector.broadcast %49 : vector<1x128xf32> to vector<32x128xf32>
    %51 = arith.addf %48, %50 : vector<32x128xf32>
    %52 = arith.truncf %47 : vector<32x128xf32> to vector<32x128xbf16>
    %53 = tpu.concatenate %52, %11 in 0 : vector<32x128xbf16>, vector<96x128xbf16> -> vector<128x128xbf16>
    %54 = arith.truncf %51 : vector<32x128xf32> to vector<32x128xbf16>
    %55 = tpu.concatenate %54, %11 in 0 : vector<32x128xbf16>, vector<96x128xbf16> -> vector<128x128xbf16>
    %56 = arith.truncf %43 : vector<32x128xf32> to vector<32x128xbf16>
    %cst_24 = arith.constant dense<0.000000e+00> : vector<32x128xf32>
    %57 = tpu.matmul %56, %53, %cst_24 {dimension_numbers = #tpu.dot_dimension_numbers<[1], [1], [0], [0], [0, 0, 1, 0], [], []>} : vector<32x128xbf16>, vector<128x128xbf16>, vector<32x128xf32> -> vector<32x128xf32>
    %cst_25 = arith.constant 0.0883883461 : f32
    %58 = vector.broadcast %cst_25 : f32 to vector<32x128xf32>
    %59 = arith.mulf %57, %58 : vector<32x128xf32>
    %cst_26 = arith.constant -1.000000e+09 : f32
    %60 = vector.broadcast %cst_26 : f32 to vector<32x128xf32>
    %61 = arith.select %10, %60, %59 : vector<32x128xi1>, vector<32x128xf32>
    %cst_27 = arith.constant dense<0xFF800000> : vector<32xf32>
    %62 = vector.multi_reduction <maximumf>, %61, %cst_27 [1] : vector<32x128xf32> to vector<32xf32>
    %63 = vector.shape_cast %62 : vector<32xf32> to vector<32x1xf32>
    %64 = vector.broadcast %63 : vector<32x1xf32> to vector<32x128xf32>
    %65 = arith.subf %61, %64 : vector<32x128xf32>
    %66 = math.exp %65 : vector<32x128xf32>
    %cst_28 = arith.constant dense<0.000000e+00> : vector<32xf32>
    %67 = vector.multi_reduction <add>, %66, %cst_28 [1] : vector<32x128xf32> to vector<32xf32>
    %68 = vector.shape_cast %67 : vector<32xf32> to vector<32x1xf32>
    %69 = tpu.reciprocal %68 {approx = true} : vector<32x1xf32> -> vector<32x1xf32>
    %70 = vector.broadcast %69 : vector<32x1xf32> to vector<32x128xf32>
    %71 = arith.mulf %66, %70 : vector<32x128xf32>
    %c0_29 = arith.constant 0 : index
    %c0_30 = arith.constant 0 : index
    %c0_31 = arith.constant 0 : index
    %72 = vector.load %arg7[%c0_29, %c0_30, %c0_31] : memref<2x32x128xf32, #tpu.memory_space<vmem>>, vector<1x32x128xf32>
    %73 = vector.shape_cast %72 : vector<1x32x128xf32> to vector<32x128xf32>
    %74 = vector.shape_cast %71 : vector<32x128xf32> to vector<1x32x128xf32>
    tpu.vector_store %arg7[%c0_29, %c0_30, %c0_31], %74 {strides = array<i32>} : memref<2x32x128xf32, #tpu.memory_space<vmem>>, vector<1x32x128xf32>,
    %75 = arith.truncf %71 : vector<32x128xf32> to vector<32x128xbf16>
    %cst_32 = arith.constant dense<0.000000e+00> : vector<32x128xf32>
    %76 = tpu.matmul %75, %55, %cst_32 {dimension_numbers = #tpu.dot_dimension_numbers<[1], [0], [0], [1], [0, 0, 1, 1], [], []>} : vector<32x128xbf16>, vector<128x128xbf16>, vector<32x128xf32> -> vector<32x128xf32>
    %c0_33 = arith.constant 0 : index
    %c0_34 = arith.constant 0 : index
    %c0_35 = arith.constant 0 : index
    %77 = vector.load %arg3[%c0_33, %c0_34, %c0_35] : memref<2x128x128xbf16, #tpu.memory_space<vmem>>, vector<1x128x128xbf16>
    %78 = vector.shape_cast %77 : vector<1x128x128xbf16> to vector<128x128xbf16>
    %79 = arith.truncf %76 : vector<32x128xf32> to vector<32x128xbf16>
    %cst_36 = arith.constant dense<0.000000e+00> : vector<32x128xf32>
    %80 = tpu.matmul %79, %78, %cst_36 {dimension_numbers = #tpu.dot_dimension_numbers<[1], [0], [0], [1], [0, 0, 1, 1], [], []>} : vector<32x128xbf16>, vector<128x128xbf16>, vector<32x128xf32> -> vector<32x128xf32>
    %c8 = arith.constant 8 : index
    %c0_37 = arith.constant 0 : index
    %81 = vector.load %arg1[%c8, %c0_37] : memref<19x128xf32, #tpu.memory_space<vmem>>, vector<1x128xf32>
    %82 = vector.broadcast %81 : vector<1x128xf32> to vector<32x128xf32>
    %83 = arith.addf %80, %82 : vector<32x128xf32>
    %84 = arith.addf %6, %83 : vector<32x128xf32>
    %c4 = arith.constant 4 : index
    %c0_38 = arith.constant 0 : index
    %85 = vector.load %arg1[%c4, %c0_38] : memref<19x128xf32, #tpu.memory_space<vmem>>, vector<1x128xf32>
    %c6 = arith.constant 6 : index
    %c0_39 = arith.constant 0 : index
    %86 = vector.load %arg1[%c6, %c0_39] : memref<19x128xf32, #tpu.memory_space<vmem>>, vector<1x128xf32>
    %cst_40 = arith.constant dense<0.000000e+00> : vector<32xf32>
    %87 = vector.multi_reduction <add>, %84, %cst_40 [1] : vector<32x128xf32> to vector<32xf32>
    %88 = vector.shape_cast %87 : vector<32xf32> to vector<32x1xf32>
    %cst_41 = arith.constant 1.280000e+02 : f32
    %89 = vector.broadcast %cst_41 : f32 to vector<32x1xf32>
    %90 = arith.divf %88, %89 : vector<32x1xf32>
    %91 = vector.broadcast %90 : vector<32x1xf32> to vector<32x128xf32>
    %92 = arith.subf %84, %91 : vector<32x128xf32>
    %93 = arith.mulf %92, %92 : vector<32x128xf32>
    %cst_42 = arith.constant dense<0.000000e+00> : vector<32xf32>
    %94 = vector.multi_reduction <add>, %93, %cst_42 [1] : vector<32x128xf32> to vector<32xf32>
    %95 = vector.shape_cast %94 : vector<32xf32> to vector<32x1xf32>
    %cst_43 = arith.constant 1.280000e+02 : f32
    %96 = vector.broadcast %cst_43 : f32 to vector<32x1xf32>
    %97 = arith.divf %95, %96 : vector<32x1xf32>
    %98 = vector.broadcast %90 : vector<32x1xf32> to vector<32x128xf32>
    %99 = arith.subf %84, %98 : vector<32x128xf32>
    %cst_44 = arith.constant 9.99999974E-6 : f32
    %100 = vector.broadcast %cst_44 : f32 to vector<32x1xf32>
    %101 = arith.addf %97, %100 : vector<32x1xf32>
    %102 = math.rsqrt %101 : vector<32x1xf32>
    %103 = vector.broadcast %102 : vector<32x1xf32> to vector<32x128xf32>
    %104 = arith.mulf %99, %103 : vector<32x128xf32>
    %105 = vector.broadcast %85 : vector<1x128xf32> to vector<32x128xf32>
    %106 = arith.mulf %104, %105 : vector<32x128xf32>
    %107 = vector.broadcast %86 : vector<1x128xf32> to vector<32x128xf32>
    %108 = arith.addf %106, %107 : vector<32x128xf32>
    %c0_45 = arith.constant 0 : index
    %c0_46 = arith.constant 0 : index
    %c0_47 = arith.constant 0 : index
    %109 = vector.load %arg4[%c0_45, %c0_46, %c0_47] : memref<2x128x128xbf16, #tpu.memory_space<vmem>>, vector<1x128x128xbf16>
    %110 = vector.shape_cast %109 : vector<1x128x128xbf16> to vector<128x128xbf16>
    %111 = arith.truncf %108 : vector<32x128xf32> to vector<32x128xbf16>
    %cst_48 = arith.constant dense<0.000000e+00> : vector<32x128xf32>
    %112 = tpu.matmul %111, %110, %cst_48 {dimension_numbers = #tpu.dot_dimension_numbers<[1], [0], [0], [1], [0, 0, 1, 1], [], []>} : vector<32x128xbf16>, vector<128x128xbf16>, vector<32x128xf32> -> vector<32x128xf32>
    %c10 = arith.constant 10 : index
    %c0_49 = arith.constant 0 : index
    %113 = vector.load %arg1[%c10, %c0_49] : memref<19x128xf32, #tpu.memory_space<vmem>>, vector<1x128xf32>
    %114 = vector.broadcast %113 : vector<1x128xf32> to vector<32x128xf32>
    %115 = arith.addf %112, %114 : vector<32x128xf32>
    %116 = arith.addf %84, %115 : vector<32x128xf32>
    %c1_50 = arith.constant 1 : index
    %c0_51 = arith.constant 0 : index
    %117 = vector.load %arg1[%c1_50, %c0_51] : memref<19x128xf32, #tpu.memory_space<vmem>>, vector<1x128xf32>
    %c3 = arith.constant 3 : index
    %c0_52 = arith.constant 0 : index
    %118 = vector.load %arg1[%c3, %c0_52] : memref<19x128xf32, #tpu.memory_space<vmem>>, vector<1x128xf32>
    %cst_53 = arith.constant dense<0.000000e+00> : vector<32xf32>
    %119 = vector.multi_reduction <add>, %116, %cst_53 [1] : vector<32x128xf32> to vector<32xf32>
    %120 = vector.shape_cast %119 : vector<32xf32> to vector<32x1xf32>
    %cst_54 = arith.constant 1.280000e+02 : f32
    %121 = vector.broadcast %cst_54 : f32 to vector<32x1xf32>
    %122 = arith.divf %120, %121 : vector<32x1xf32>
    %123 = vector.broadcast %122 : vector<32x1xf32> to vector<32x128xf32>
    %124 = arith.subf %116, %123 : vector<32x128xf32>
    %125 = arith.mulf %124, %124 : vector<32x128xf32>
    %cst_55 = arith.constant dense<0.000000e+00> : vector<32xf32>
    %126 = vector.multi_reduction <add>, %125, %cst_55 [1] : vector<32x128xf32> to vector<32xf32>
    %127 = vector.shape_cast %126 : vector<32xf32> to vector<32x1xf32>
    %cst_56 = arith.constant 1.280000e+02 : f32
    %128 = vector.broadcast %cst_56 : f32 to vector<32x1xf32>
    %129 = arith.divf %127, %128 : vector<32x1xf32>
    %130 = vector.broadcast %122 : vector<32x1xf32> to vector<32x128xf32>
    %131 = arith.subf %116, %130 : vector<32x128xf32>
    %cst_57 = arith.constant 9.99999974E-6 : f32
    %132 = vector.broadcast %cst_57 : f32 to vector<32x1xf32>
    %133 = arith.addf %129, %132 : vector<32x1xf32>
    %134 = math.rsqrt %133 : vector<32x1xf32>
    %135 = vector.broadcast %134 : vector<32x1xf32> to vector<32x128xf32>
    %136 = arith.mulf %131, %135 : vector<32x128xf32>
    %137 = vector.broadcast %117 : vector<1x128xf32> to vector<32x128xf32>
    %138 = arith.mulf %136, %137 : vector<32x128xf32>
    %139 = vector.broadcast %118 : vector<1x128xf32> to vector<32x128xf32>
    %140 = arith.addf %138, %139 : vector<32x128xf32>
    %c1_58 = arith.constant 1 : index
    %c0_59 = arith.constant 0 : index
    %c0_60 = arith.constant 0 : index
    %141 = vector.load %arg2[%c1_58, %c0_59, %c0_60] : memref<2x128x384xbf16, #tpu.memory_space<vmem>>, vector<1x128x384xbf16>
    %142 = vector.shape_cast %141 : vector<1x128x384xbf16> to vector<128x384xbf16>
    %143 = arith.truncf %140 : vector<32x128xf32> to vector<32x128xbf16>
    %cst_61 = arith.constant dense<0.000000e+00> : vector<32x384xf32>
    %144 = tpu.matmul %143, %142, %cst_61 {dimension_numbers = #tpu.dot_dimension_numbers<[1], [0], [0], [1], [0, 0, 1, 1], [], []>} : vector<32x128xbf16>, vector<128x384xbf16>, vector<32x384xf32> -> vector<32x384xf32>
    %145 = vector.extract_strided_slice %144 {offsets = [0, 0], sizes = [32, 128], strides = [1, 1]} : vector<32x384xf32> to vector<32x128xf32>
    %c16 = arith.constant 16 : index
    %c0_62 = arith.constant 0 : index
    %146 = vector.load %arg1[%c16, %c0_62] : memref<19x128xf32, #tpu.memory_space<vmem>>, vector<1x128xf32>
    %147 = vector.broadcast %146 : vector<1x128xf32> to vector<32x128xf32>
    %148 = arith.addf %145, %147 : vector<32x128xf32>
    %149 = vector.extract_strided_slice %144 {offsets = [0, 128], sizes = [32, 128], strides = [1, 1]} : vector<32x384xf32> to vector<32x128xf32>
    %c17 = arith.constant 17 : index
    %c0_63 = arith.constant 0 : index
    %150 = vector.load %arg1[%c17, %c0_63] : memref<19x128xf32, #tpu.memory_space<vmem>>, vector<1x128xf32>
    %151 = vector.broadcast %150 : vector<1x128xf32> to vector<32x128xf32>
    %152 = arith.addf %149, %151 : vector<32x128xf32>
    %153 = vector.extract_strided_slice %144 {offsets = [0, 256], sizes = [32, 128], strides = [1, 1]} : vector<32x384xf32> to vector<32x128xf32>
    %c18 = arith.constant 18 : index
    %c0_64 = arith.constant 0 : index
    %154 = vector.load %arg1[%c18, %c0_64] : memref<19x128xf32, #tpu.memory_space<vmem>>, vector<1x128xf32>
    %155 = vector.broadcast %154 : vector<1x128xf32> to vector<32x128xf32>
    %156 = arith.addf %153, %155 : vector<32x128xf32>
    %157 = arith.truncf %152 : vector<32x128xf32> to vector<32x128xbf16>
    %158 = tpu.concatenate %157, %11 in 0 : vector<32x128xbf16>, vector<96x128xbf16> -> vector<128x128xbf16>
    %159 = arith.truncf %156 : vector<32x128xf32> to vector<32x128xbf16>
    %160 = tpu.concatenate %159, %11 in 0 : vector<32x128xbf16>, vector<96x128xbf16> -> vector<128x128xbf16>
    %161 = arith.truncf %148 : vector<32x128xf32> to vector<32x128xbf16>
    %cst_65 = arith.constant dense<0.000000e+00> : vector<32x128xf32>
    %162 = tpu.matmul %161, %158, %cst_65 {dimension_numbers = #tpu.dot_dimension_numbers<[1], [1], [0], [0], [0, 0, 1, 0], [], []>} : vector<32x128xbf16>, vector<128x128xbf16>, vector<32x128xf32> -> vector<32x128xf32>
    %cst_66 = arith.constant 0.0883883461 : f32
    %163 = vector.broadcast %cst_66 : f32 to vector<32x128xf32>
    %164 = arith.mulf %162, %163 : vector<32x128xf32>
    %cst_67 = arith.constant -1.000000e+09 : f32
    %165 = vector.broadcast %cst_67 : f32 to vector<32x128xf32>
    %166 = arith.select %10, %165, %164 : vector<32x128xi1>, vector<32x128xf32>
    %cst_68 = arith.constant dense<0xFF800000> : vector<32xf32>
    %167 = vector.multi_reduction <maximumf>, %166, %cst_68 [1] : vector<32x128xf32> to vector<32xf32>
    %168 = vector.shape_cast %167 : vector<32xf32> to vector<32x1xf32>
    %169 = vector.broadcast %168 : vector<32x1xf32> to vector<32x128xf32>
    %170 = arith.subf %166, %169 : vector<32x128xf32>
    %171 = math.exp %170 : vector<32x128xf32>
    %cst_69 = arith.constant dense<0.000000e+00> : vector<32xf32>
    %172 = vector.multi_reduction <add>, %171, %cst_69 [1] : vector<32x128xf32> to vector<32xf32>
    %173 = vector.shape_cast %172 : vector<32xf32> to vector<32x1xf32>
    %174 = tpu.reciprocal %173 {approx = true} : vector<32x1xf32> -> vector<32x1xf32>
    %175 = vector.broadcast %174 : vector<32x1xf32> to vector<32x128xf32>
    %176 = arith.mulf %171, %175 : vector<32x128xf32>
    %c1_70 = arith.constant 1 : index
    %c0_71 = arith.constant 0 : index
    %c0_72 = arith.constant 0 : index
    %177 = vector.load %arg7[%c1_70, %c0_71, %c0_72] : memref<2x32x128xf32, #tpu.memory_space<vmem>>, vector<1x32x128xf32>
    %178 = vector.shape_cast %177 : vector<1x32x128xf32> to vector<32x128xf32>
    %179 = vector.shape_cast %176 : vector<32x128xf32> to vector<1x32x128xf32>
    tpu.vector_store %arg7[%c1_70, %c0_71, %c0_72], %179 {strides = array<i32>} : memref<2x32x128xf32, #tpu.memory_space<vmem>>, vector<1x32x128xf32>,
    %180 = arith.truncf %176 : vector<32x128xf32> to vector<32x128xbf16>
    %cst_73 = arith.constant dense<0.000000e+00> : vector<32x128xf32>
    %181 = tpu.matmul %180, %160, %cst_73 {dimension_numbers = #tpu.dot_dimension_numbers<[1], [0], [0], [1], [0, 0, 1, 1], [], []>} : vector<32x128xbf16>, vector<128x128xbf16>, vector<32x128xf32> -> vector<32x128xf32>
    %c1_74 = arith.constant 1 : index
    %c0_75 = arith.constant 0 : index
    %c0_76 = arith.constant 0 : index
    %182 = vector.load %arg3[%c1_74, %c0_75, %c0_76] : memref<2x128x128xbf16, #tpu.memory_space<vmem>>, vector<1x128x128xbf16>
    %183 = vector.shape_cast %182 : vector<1x128x128xbf16> to vector<128x128xbf16>
    %184 = arith.truncf %181 : vector<32x128xf32> to vector<32x128xbf16>
    %cst_77 = arith.constant dense<0.000000e+00> : vector<32x128xf32>
    %185 = tpu.matmul %184, %183, %cst_77 {dimension_numbers = #tpu.dot_dimension_numbers<[1], [0], [0], [1], [0, 0, 1, 1], [], []>} : vector<32x128xbf16>, vector<128x128xbf16>, vector<32x128xf32> -> vector<32x128xf32>
    %c9 = arith.constant 9 : index
    %c0_78 = arith.constant 0 : index
    %186 = vector.load %arg1[%c9, %c0_78] : memref<19x128xf32, #tpu.memory_space<vmem>>, vector<1x128xf32>
    %187 = vector.broadcast %186 : vector<1x128xf32> to vector<32x128xf32>
    %188 = arith.addf %185, %187 : vector<32x128xf32>
    %189 = arith.addf %116, %188 : vector<32x128xf32>
    %c5 = arith.constant 5 : index
    %c0_79 = arith.constant 0 : index
    %190 = vector.load %arg1[%c5, %c0_79] : memref<19x128xf32, #tpu.memory_space<vmem>>, vector<1x128xf32>
    %c7 = arith.constant 7 : index
    %c0_80 = arith.constant 0 : index
    %191 = vector.load %arg1[%c7, %c0_80] : memref<19x128xf32, #tpu.memory_space<vmem>>, vector<1x128xf32>
    %cst_81 = arith.constant dense<0.000000e+00> : vector<32xf32>
    %192 = vector.multi_reduction <add>, %189, %cst_81 [1] : vector<32x128xf32> to vector<32xf32>
    %193 = vector.shape_cast %192 : vector<32xf32> to vector<32x1xf32>
    %cst_82 = arith.constant 1.280000e+02 : f32
    %194 = vector.broadcast %cst_82 : f32 to vector<32x1xf32>
    %195 = arith.divf %193, %194 : vector<32x1xf32>
    %196 = vector.broadcast %195 : vector<32x1xf32> to vector<32x128xf32>
    %197 = arith.subf %189, %196 : vector<32x128xf32>
    %198 = arith.mulf %197, %197 : vector<32x128xf32>
    %cst_83 = arith.constant dense<0.000000e+00> : vector<32xf32>
    %199 = vector.multi_reduction <add>, %198, %cst_83 [1] : vector<32x128xf32> to vector<32xf32>
    %200 = vector.shape_cast %199 : vector<32xf32> to vector<32x1xf32>
    %cst_84 = arith.constant 1.280000e+02 : f32
    %201 = vector.broadcast %cst_84 : f32 to vector<32x1xf32>
    %202 = arith.divf %200, %201 : vector<32x1xf32>
    %203 = vector.broadcast %195 : vector<32x1xf32> to vector<32x128xf32>
    %204 = arith.subf %189, %203 : vector<32x128xf32>
    %cst_85 = arith.constant 9.99999974E-6 : f32
    %205 = vector.broadcast %cst_85 : f32 to vector<32x1xf32>
    %206 = arith.addf %202, %205 : vector<32x1xf32>
    %207 = math.rsqrt %206 : vector<32x1xf32>
    %208 = vector.broadcast %207 : vector<32x1xf32> to vector<32x128xf32>
    %209 = arith.mulf %204, %208 : vector<32x128xf32>
    %210 = vector.broadcast %190 : vector<1x128xf32> to vector<32x128xf32>
    %211 = arith.mulf %209, %210 : vector<32x128xf32>
    %212 = vector.broadcast %191 : vector<1x128xf32> to vector<32x128xf32>
    %213 = arith.addf %211, %212 : vector<32x128xf32>
    %c1_86 = arith.constant 1 : index
    %c0_87 = arith.constant 0 : index
    %c0_88 = arith.constant 0 : index
    %214 = vector.load %arg4[%c1_86, %c0_87, %c0_88] : memref<2x128x128xbf16, #tpu.memory_space<vmem>>, vector<1x128x128xbf16>
    %215 = vector.shape_cast %214 : vector<1x128x128xbf16> to vector<128x128xbf16>
    %216 = arith.truncf %213 : vector<32x128xf32> to vector<32x128xbf16>
    %cst_89 = arith.constant dense<0.000000e+00> : vector<32x128xf32>
    %217 = tpu.matmul %216, %215, %cst_89 {dimension_numbers = #tpu.dot_dimension_numbers<[1], [0], [0], [1], [0, 0, 1, 1], [], []>} : vector<32x128xbf16>, vector<128x128xbf16>, vector<32x128xf32> -> vector<32x128xf32>
    %c11 = arith.constant 11 : index
    %c0_90 = arith.constant 0 : index
    %218 = vector.load %arg1[%c11, %c0_90] : memref<19x128xf32, #tpu.memory_space<vmem>>, vector<1x128xf32>
    %219 = vector.broadcast %218 : vector<1x128xf32> to vector<32x128xf32>
    %220 = arith.addf %217, %219 : vector<32x128xf32>
    %221 = arith.addf %189, %220 : vector<32x128xf32>
    %222 = vector.extract_strided_slice %221 {offsets = [0, 0], sizes = [8, 128], strides = [1, 1]} : vector<32x128xf32> to vector<8x128xf32>
    %223 = vector.extract_strided_slice %221 {offsets = [16, 0], sizes = [8, 128], strides = [1, 1]} : vector<32x128xf32> to vector<8x128xf32>
    %224 = tpu.concatenate %222, %223 in 0 : vector<8x128xf32>, vector<8x128xf32> -> vector<16x128xf32>
    %c0_91 = arith.constant 0 : index
    %c0_92 = arith.constant 0 : index
    %225 = vector.load %arg5[%c0_91, %c0_92] : memref<128x128xbf16, #tpu.memory_space<vmem>>, vector<128x128xbf16>
    %226 = arith.truncf %224 : vector<16x128xf32> to vector<16x128xbf16>
    %cst_93 = arith.constant dense<0.000000e+00> : vector<16x128xf32>
    %227 = tpu.matmul %226, %225, %cst_93 {dimension_numbers = #tpu.dot_dimension_numbers<[1], [0], [0], [1], [0, 0, 1, 1], [], []>} : vector<16x128xbf16>, vector<128x128xbf16>, vector<16x128xf32> -> vector<16x128xf32>
    %c12 = arith.constant 12 : index
    %c0_94 = arith.constant 0 : index
    %228 = vector.load %arg1[%c12, %c0_94] : memref<19x128xf32, #tpu.memory_space<vmem>>, vector<1x128xf32>
    %229 = vector.broadcast %228 : vector<1x128xf32> to vector<16x128xf32>
    %230 = arith.addf %227, %229 : vector<16x128xf32>
    %c0_95 = arith.constant 0 : index
    %c0_96 = arith.constant 0 : index
    %231 = vector.load %arg6[%c0_95, %c0_96] : memref<16x128xf32, #tpu.memory_space<vmem>>, vector<16x128xf32>
    tpu.vector_store %arg6[%c0_95, %c0_96], %230 {strides = array<i32>} : memref<16x128xf32, #tpu.memory_space<vmem>>, vector<16x128xf32>,
    return
  }
}

</mosaic_0001>

<bundles_post_ra>
// kernel: transformer_classification.1
= control target key start
LH: loop header
LB: loop body
LE: loop exit
PB: predicated region body
PF: predicated region fallthrough
CT: control target
= control target key end

     0   :  { %v2419_v51 = vmov 0   ;;  %vm2421_vm4 = vmmov 0   ;;  %s3020_s0 = inlined_call_operand.vmem [shape: f32[3,32,128], index: 0, kind: input, shape index: {}]   ;;  %s3021_s2 = inlined_call_operand.vmem [shape: bf16[2,128,384], index: 2, kind: input, shape index: {}]   ;;  %s3022_s1 = inlined_call_operand.vmem [shape: f32[19,128], index: 1, kind: input, shape index: {}]   ;;  %s3023_s3 = inlined_call_operand.vmem [shape: bf16[2,128,128], index: 3, kind: input, shape index: {}]   ;;  %s3024_s7 = inlined_call_operand.vmem [shape: f32[2,32,128], index: 7, kind: output, shape index: {1}]   ;;  %s3025_s4 = inlined_call_operand.vmem [shape: bf16[2,128,128], index: 4, kind: input, shape index: {}]   ;;  %s3026_s5 = inlined_call_operand.vmem [shape: bf16[128,128], index: 5, kind: input, shape index: {}]   ;;  %s3027_s6 = inlined_call_operand.vmem [shape: f32[16,128], index: 6, kind: output, shape index: {0}]  }
   0x1   :  { %v26_v0 = vld [vmem:[%s3020_s0] sm:$0xff]  ;;  %v28_v2 = vld [vmem:[%s3020_s0 + $0x10] sm:$0xff]  ;;  %v27_v6 = vld [vmem:[%s3020_s0 + $0x8] sm:$0xff]  ;;  %309 = vmatprep.mubr.bf16.mxu0 %v2419_v51 }
   0x2   :  { %v1808_v1 = vld [vmem:[%s3020_s0 + $0x20] sm:$0xff]  ;;  %v30_v3 = vmul.f32 11.313708, %v26_v0  ;;  %v32_v4 = vmul.f32 11.313708, %v28_v2  ;;  %v1810_v5 = vld [vmem:[%s3020_s0 + $0x30] sm:$0xff] }
   0x3   :  { %v31_v7 = vmul.f32 11.313708, %v27_v6  ;;  %v1809_v8 = vld [vmem:[%s3020_s0 + $0x28] sm:$0xff]  ;;  %v29_v9 = vld [vmem:[%s3020_s0 + $0x18] sm:$0xff]  ;;  %v2251_v16 = vld [vmem:[%s3021_s2 + $0x4] ss:$12 sps:$4 sm:$0xff]  }
   0x4   :  { %v1811_v10 = vld [vmem:[%s3020_s0 + $0x38] sm:$0xff]  ;;  %v2486_v11 = vadd.f32 %v1808_v1, %v30_v3  ;;  %v2488_v12 = vadd.f32 %v1810_v5, %v32_v4  ;;  %v33_v13 = vmul.f32 11.313708, %v29_v9  ;;  %v2253_v17 = vld [vmem:[%s3021_s2] ss:$12 sps:$4 sm:$0xff]   ;;  %277 = vmatprep.subr.bf16.mxu0 %v2251_v16 }
   0x5   :  { %v2492_v14 = vadd.f32 %v1809_v8, %v31_v7  ;;  %v2254_v18 = vld [vmem:[%s3021_s2 + $0x1c] ss:$12 sps:$4 sm:$0xff]   ;;  %278 = vmatpush1.bf16.msra.mxu0 %v2253_v17  ;;  %v2257_v36 = vld [vmem:[%s3021_s2 + $0x18] ss:$12 sps:$4 sm:$0xff]   ;;  %v2258_v37 = vld [vmem:[%s3021_s2 + $0x34] ss:$12 sps:$4 sm:$0xff]  }
   0x6   :  { %54 = vadd.xlane.f32.xlu0 %v2486_v11  ;;  %58 = vadd.xlane.f32.xlu1 %v2488_v12  ;;  %v2494_v15 = vadd.f32 %v1811_v10, %v33_v13  ;;  %v2256_v19 = vld [vmem:[%s3021_s2 + $0x8] ss:$12 sps:$4 sm:$0xff]   ;;  %v2260_v38 = vld [vmem:[%s3021_s2 + $0x20] ss:$12 sps:$4 sm:$0xff]   ;;  %v2261_v39 = vld [vmem:[%s3021_s2 + $0x30] ss:$12 sps:$4 sm:$0xff]  }
   0x7   :  { %279 = vmatprep.subr.bf16.mxu0 %v2254_v18  ;;  %2076 = vmatprep.subr.bf16.mxu1 %v2256_v19  ;;  %v2262_v40 = vld [vmem:[%s3021_s2 + $0x4c] ss:$12 sps:$4 sm:$0xff]   ;;  %v2265_v42 = vld [vmem:[%s3021_s2 + $0x48] ss:$12 sps:$4 sm:$0xff]   ;;  %v2266_v43 = vld [vmem:[%s3021_s2 + $0x64] ss:$12 sps:$4 sm:$0xff]  }
   0x8   :  { %2077 = vmatpush3.bf16.msra.mxu1 %v2256_v19  ;;  %v2264_v41 = vld [vmem:[%s3021_s2 + $0x38] ss:$12 sps:$4 sm:$0xff]   ;;  %v2268_v44 = vld [vmem:[%s3021_s2 + $0x50] ss:$12 sps:$4 sm:$0xff]   ;;  %v2269_v45 = vld [vmem:[%s3021_s2 + $0x60] ss:$12 sps:$4 sm:$0xff]  }
   0x9   :  { %280 = vmatpush1.bf16.msra.mxu0 %v2257_v36  ;;  %2078 = vmatprep.subr.bf16.mxu1 %v2260_v38  ;;  %v2270_v46 = vld [vmem:[%s3021_s2 + $0x7c] ss:$12 sps:$4 sm:$0xff]   ;;  %v2273_v48 = vld [vmem:[%s3021_s2 + $0x78] ss:$12 sps:$4 sm:$0xff]   ;;  %v2274_v49 = vld [vmem:[%s3021_s2 + $0x94] ss:$12 sps:$4 sm:$0xff]  }
   0xa   :  { %56 = vadd.xlane.f32.xlu0 %v2492_v14  ;;  %60 = vadd.xlane.f32.xlu1 %v2494_v15  ;;  %v2272_v47 = vld [vmem:[%s3021_s2 + $0x68] ss:$12 sps:$4 sm:$0xff]   ;;  %v2276_v50 = vld [vmem:[%s3021_s2 + $0x80] ss:$12 sps:$4 sm:$0xff]   ;;  %v2277_v52 = vld [vmem:[%s3021_s2 + $0x90] ss:$12 sps:$4 sm:$0xff]  }
   0xb   :  { %281 = vmatprep.subr.bf16.mxu0 %v2258_v37  ;;  %v2278_v53 = vld [vmem:[%s3021_s2 + $0xac] ss:$12 sps:$4 sm:$0xff]   ;;  %v2281_v55 = vld [vmem:[%s3021_s2 + $0xa8] ss:$12 sps:$4 sm:$0xff]   ;;  %v2282_v56 = vld [vmem:[%s3021_s2 + $0xb0] ss:$12 sps:$4 sm:$0xff]  }
   0xc   :  { %2079 = vmatpush3.bf16.msra.mxu1 %v2260_v38  ;;  %v2280_v54 = vld [vmem:[%s3021_s2 + $0x98] ss:$12 sps:$4 sm:$0xff]   ;;  %v1816_v7 = vld [vmem:[%s3022_s1] ss:$0 sm:$0xff]  ;;  %v1817_v16 = vld [vmem:[%s3022_s1 + $0x2] ss:$0 sm:$0xff] }
   0xd   :  { %282 = vmatpush1.bf16.msra.mxu0 %v2261_v39  ;;  %2080 = vmatprep.subr.bf16.mxu1 %v2264_v41 }
   0xe   :  { %283 = vmatprep.subr.bf16.mxu0 %v2262_v40  ;;  %v1844_v40 = vld [vmem:[%s3022_s1 + $0xf] ss:$0 sm:$0xff] }
  0x10   :  { %2081 = vmatpush3.bf16.msra.mxu1 %v2264_v41 }
  0x11   :  { %284 = vmatpush1.bf16.msra.mxu0 %v2265_v42  ;;  %2082 = vmatprep.subr.bf16.mxu1 %v2268_v44 }
  0x12   :  { %285 = vmatprep.subr.bf16.mxu0 %v2266_v43 }
  0x14   :  { %2083 = vmatpush3.bf16.msra.mxu1 %v2268_v44 }
  0x15   :  { %286 = vmatpush1.bf16.msra.mxu0 %v2269_v45  ;;  %2084 = vmatprep.subr.bf16.mxu1 %v2272_v47 }
  0x16   :  { %287 = vmatprep.subr.bf16.mxu0 %v2270_v46 }
  0x18   :  { %2085 = vmatpush3.bf16.msra.mxu1 %v2272_v47 }
  0x19   :  { %288 = vmatpush1.bf16.msra.mxu0 %v2273_v48  ;;  %2086 = vmatprep.subr.bf16.mxu1 %v2276_v50 }
  0x1a   :  { %289 = vmatprep.subr.bf16.mxu0 %v2274_v49 }
  0x1c   :  { %2087 = vmatpush3.bf16.msra.mxu1 %v2276_v50 }
  0x1d   :  { %290 = vmatpush1.bf16.msra.mxu0 %v2277_v52  ;;  %2088 = vmatprep.subr.bf16.mxu1 %v2280_v54 }
  0x1e   :  { %291 = vmatprep.subr.bf16.mxu0 %v2278_v53 }
  0x20   :  { %2089 = vmatpush3.bf16.msra.mxu1 %v2280_v54 }
  0x21   :  { %292 = vmatpush1.bf16.msra.mxu0 %v2281_v55  ;;  %2090 = vmatprep.subr.bf16.mxu1 %v2282_v56 }
  0x24   :  { %2091 = vmatpush3.bf16.msra.mxu1 %v2282_v56 }
  0x93   :  { %v55_v20 = vpop.xlane.xlu0 %54  ;;  %v59_v21 = vpop.xlane.xlu1 %58 }
  0x94   :  { %v63_v22 = vmul.f32 0.0078125, %v55_v20  ;;  %v65_v23 = vmul.f32 0.0078125, %v59_v21 }
  0x96   :  { %v2511_v24 = vsub.f32 %v2486_v11, %v63_v22  ;;  %v2514_v25 = vsub.f32 %v2488_v12, %v65_v23 }
  0x97   :  { %v57_v26 = vpop.xlane.xlu0 %56  ;;  %v61_v27 = vpop.xlane.xlu1 %60 }
  0x98   :  { %v64_v28 = vmul.f32 0.0078125, %v57_v26  ;;  %v71_v29 = vmul.f32 %v2511_v24, %v2511_v24  ;;  %v66_v30 = vmul.f32 0.0078125, %v61_v27  ;;  %v73_v33 = vmul.f32 %v2514_v25, %v2514_v25 }
  0x9a   :  { %v2519_v31 = vsub.f32 %v2492_v14, %v64_v28  ;;  %75 = vadd.xlane.f32.xlu0 %v71_v29  ;;  %v2522_v32 = vsub.f32 %v2494_v15, %v66_v30 }
  0x9c   :  { %v72_v34 = vmul.f32 %v2519_v31, %v2519_v31  ;;  %v74_v35 = vmul.f32 %v2522_v32, %v2522_v32 }
  0x9e   :  { %79 = vadd.xlane.f32.xlu0 %v73_v33  ;;  %77 = vadd.xlane.f32.xlu1 %v72_v34 }
  0xa2   :  { %81 = vadd.xlane.f32.xlu1 %v74_v35 }
 0x127   :  { %v76_v57 = vpop.xlane.xlu0 %75 }
 0x128   :  { %v83_v58 = vmul.f32 0.0078125, %v76_v57 }
 0x12a   :  { %v87_v59 = vadd.f32 1e-05, %v83_v58 }
 0x12b   :  { %v78_v60 = vpop.xlane.xlu1 %77  ;;  %v80_v61 = vpop.xlane.xlu0 %79 }
 0x12c   :  { %2355 = vrsqrt.f32 %v87_v59  ;;  %v84_v62 = vmul.f32 0.0078125, %v78_v60  ;;  %v85_v63 = vmul.f32 0.0078125, %v80_v61 }
 0x12e   :  { %v88_v0 = vadd.f32 1e-05, %v84_v62  ;;  %v89_v1 = vadd.f32 1e-05, %v85_v63  ;;  %v2614_v63 = vld [vmem:[%s3020_s0 + $0x40] sm:$0xff] }
 0x12f   :  { %v82_v2 = vpop.xlane.xlu1 %81  ;;  %vm48_vm0 = vcmp.lt.f32.partialorder %v2614_v63, 0.5 }
 0x130   :  { %2357 = vrsqrt.f32 %v88_v0  ;;  %v86_v3 = vmul.f32 0.0078125, %v82_v2 }
 0x131   :  { %2359 = vrsqrt.f32 %v89_v1  ;;  %v2619_v1 = vld [vmem:[%s3020_s0 + $0x48] sm:$0xff] }
 0x132   :  { %v90_v4 = vadd.f32 1e-05, %v86_v3  ;;  %vm49_vm1 = vcmp.lt.f32.partialorder %v2619_v1, 0.5 }
 0x134   :  { %2361 = vrsqrt.f32 %v90_v4 }
 0x136   :  { %v2356_v5 = vpop.eup %2355 }
 0x137   :  { %v95_v6 = vmul.f32 %v2356_v5, %v2511_v24  ;;  %v2625_v5 = vld [vmem:[%s3020_s0 + $0x50] sm:$0xff] }
 0x138   :  { %vm50_vm2 = vcmp.lt.f32.partialorder %v2625_v5, 0.5 }
 0x139   :  { %v103_v13 = vmul.f32 %v1816_v7, %v95_v6 }
 0x13a   :  { %v2358_v8 = vpop.eup %2357 }
 0x13b   :  { %v2360_v9 = vpop.eup %2359  ;;  %v96_v10 = vmul.f32 %v2358_v8, %v2519_v31  ;;  %v111_v20 = vadd.f32 %v1817_v16, %v103_v13 }
 0x13c   :  { %v97_v17 = vmul.f32 %v2360_v9, %v2514_v25  ;;  %v1842_v25 = vld [vmem:[%s3022_s1 + $0xd] ss:$0 sm:$0xff] }
 0x13d   :  { %v104_v18 = vmul.f32 %v1816_v7, %v96_v10 }
 0x13e   :  { %v2362_v19 = vpop.eup %2361  ;;  %v105_v23 = vmul.f32 %v1816_v7, %v97_v17 }
 0x13f   :  { %v112_v21 = vadd.f32 %v1817_v16, %v104_v18  ;;  %v98_v22 = vmul.f32 %v2362_v19, %v2522_v32  ;;  %v1843_v32 = vld [vmem:[%s3022_s1 + $0xe] ss:$0 sm:$0xff] }
 0x140   :  { %v113_v27 = vadd.f32 %v1817_v16, %v105_v23 }
 0x141   :  { %v147_v24 = vpack.c.bf16 %v112_v21, %v111_v20  ;;  %v106_v26 = vmul.f32 %v1816_v7, %v98_v22  ;;  %v2631_v7 = vld [vmem:[%s3020_s0 + $0x58] sm:$0xff] }
 0x142   :  { %vm51_vm3 = vcmp.lt.f32.partialorder %v2631_v7, 0.5 }
 0x143   :  { %310 = vmatmul.mubr.bf16.vlgmr.msra.gmra.mrb[0].mxu0 %v147_v24  ;;  %2092 = vmatprep.mubr.bf16.mxu1 %v147_v24  ;;  %v114_v28 = vadd.f32 %v1817_v16, %v106_v26 }
 0x144   :  { %319 = vmatprep.mubr.bf16.mxu0 %v2419_v51 }
 0x145   :  { %v148_v29 = vpack.c.bf16 %v114_v28, %v113_v27 }
 0x147   :  { %2093 = vmatmul.mubr.bf16.vlgmr.msra.gmra.mrb[0].mxu1 %v148_v29 }
 0x14b   :  { %320 = vmatmul.mubr.bf16.gmra.mrb[4].mxu0 %v148_v29 }
 0x216   :  { %v311_v30 = vpop.f32.mrb[0].mxu0 }
 0x217   :  { %v313_v31 = vpop.f32.mrb[1].mxu0  ;;  %v384_v34 = vadd.f32 %v1842_v25, %v311_v30 }
 0x218   :  { %v315_v33 = vpop.f32.mrb[2].mxu0  ;;  %v393_v37 = vadd.f32 %v1843_v32, %v313_v31 }
 0x219   :  { %v385_v35 = vadd.f32 %v1842_v25, %v315_v33  ;;  %v317_v36 = vpop.f32.mrb[3].mxu0 }
 0x21a   :  { %v394_v38 = vadd.f32 %v1843_v32, %v317_v36  ;;  %v2094_v39 = vpop.f32.mrb[0].mxu1 }
 0x21b   :  { %v410_v41 = vpack.c.bf16 %v385_v35, %v384_v34  ;;  %v364_v42 = vpop.f32.mrb[1].mxu1  ;;  %v404_v45 = vadd.f32 %v2094_v39, %v1844_v40  ;;  %v2283_v35 = vld [vmem:[%s3023_s3] sm:$0xff]  }
 0x21c   :  { %v406_v43 = vpack.c.bf16 %v394_v38, %v393_v37  ;;  %v2095_v44 = vpop.f32.mrb[2].mxu1  ;;  %v402_v48 = vadd.f32 %v1844_v40, %v364_v42 }
 0x21d   :  { %v405_v46 = vadd.f32 %v2095_v44, %v1844_v40  ;;  %v367_v47 = vpop.f32.mrb[3].mxu1  ;;  %2100 = vmatprep.mubr.bf16.mxu1 %v410_v41 }
 0x21e   :  { %v403_v49 = vadd.f32 %v1844_v40, %v367_v47  ;;  %v321_v50 = vpop.f32.mrb[4].mxu0  ;;  %2096 = vmatprep.subr.bf16.mxu1 %v406_v43 }
 0x21f   :  { %v409_v52 = vpack.c.bf16 %v405_v46, %v404_v45  ;;  %v323_v53 = vpop.f32.mrb[5].mxu0  ;;  %2097 = vmatpush3.bf16.xpose.msra.mxu1 %v406_v43  ;;  %v386_v56 = vadd.f32 %v1842_v25, %v321_v50  ;;  %v2284_v50 = vld [vmem:[%s3023_s3 + $0x8] sm:$0xff]  }
 0x220   :  { %v408_v54 = vpack.c.bf16 %v403_v49, %v402_v48  ;;  %v325_v55 = vpop.f32.mrb[6].mxu0  ;;  %v395_v59 = vadd.f32 %v1843_v32, %v323_v53  ;;  %v2286_v53 = vld [vmem:[%s3023_s3 + $0x18] sm:$0xff]  }
 0x221   :  { %v387_v57 = vadd.f32 %v1842_v25, %v325_v55  ;;  %v327_v58 = vpop.f32.mrb[7].mxu0  ;;  %v2288_v55 = vld [vmem:[%s3023_s3 + $0x28] sm:$0xff]  }
 0x222   :  { %v396_v60 = vadd.f32 %v1843_v32, %v327_v58 }
 0x223   :  { %v411_v61 = vpack.c.bf16 %v387_v57, %v386_v56  ;;  %v2289_v56 = vld [vmem:[%s3023_s3 + $0x30] sm:$0xff]   ;;  %v2290_v57 = vld [vmem:[%s3023_s3 + $0x38] sm:$0xff]  }
 0x224   :  { %v407_v62 = vpack.c.bf16 %v396_v60, %v395_v59 }
 0x226   :  { %2098 = vmatprep.subr.bf16.mxu1 %v407_v62 }
 0x227   :  { %2099 = vmatpush3.bf16.xpose.msra.mxu1 %v407_v62 }
 0x228   :  { %2104 = vmatprep.subr.bf16.mxu1 %v408_v54 }
 0x22e   :  { %2101 = vmatmul.mubr.bf16.vlgmr.msra.gmra.mrb[4].mxu1 %v411_v61 }
 0x22f   :  { %2105 = vmatpush3.bf16.msra.mxu1 %v408_v54  ;;  %v2287_v54 = vld [vmem:[%s3023_s3 + $0x20] sm:$0xff]  }
 0x230   :  { %2106 = vmatprep.subr.bf16.mxu1 %v409_v52 }
 0x233   :  { %2107 = vmatpush3.bf16.msra.mxu1 %v409_v52  ;;  %v2285_v52 = vld [vmem:[%s3023_s3 + $0x10] sm:$0xff]  }
 0x234   :  { %2112 = vmatprep.subr.bf16.mxu1 %v2283_v35 }
 0x301   :  { %v2102_v0 = vpop.f32.mrb[4].mxu1 }
 0x302   :  { %v446_v2 = vpop.f32.mrb[5].mxu1  ;;  %v463_v8 = vmul.f32 0.088388346, %v2102_v0 }
 0x303   :  { %v461_v3 = vmul.f32 0.088388346, %v446_v2  ;;  %v2103_v4 = vpop.f32.mrb[6].mxu1  ;;  %v1845_v2 = vld [vmem:[%s3022_s1 + $0x8] ss:$0 sm:$0xff] }
 0x304   :  { %v449_v6 = vpop.f32.mrb[7].mxu1  ;;  %v464_v13 = vmul.f32 0.088388346, %v2103_v4  ;;  %v467_v17 = vsel %vm50_vm2, -1e+09, %v463_v8 }
 0x305   :  { %v462_v9 = vmul.f32 0.088388346, %v449_v6  ;;  %v465_v10 = vsel %vm48_vm0, -1e+09, %v461_v3 }
 0x306   :  { %469 = vmax.xlane.f32.xlu0 %v465_v10  ;;  %v468_v18 = vsel %vm51_vm3, -1e+09, %v464_v13 }
 0x307   :  { %v466_v16 = vsel %vm49_vm1, -1e+09, %v462_v9 }
 0x308   :  { %471 = vmax.xlane.f32.xlu1 %v466_v16 }
 0x30a   :  { %473 = vmax.xlane.f32.xlu0 %v467_v17 }
 0x30c   :  { %475 = vmax.xlane.f32.xlu1 %v468_v18 }
 0x393   :  { %v470_v19 = vpop.xlane.xlu0 %469 }
 0x394   :  { %v477_v20 = vsub.f32 %v465_v10, %v470_v19 }
 0x395   :  { %v472_v21 = vpop.xlane.xlu1 %471 }
 0x396   :  { %v481_v22 = vmul.f32 1.442695, %v477_v20  ;;  %v478_v23 = vsub.f32 %v466_v16, %v472_v21 }
 0x397   :  { %v474_v24 = vpop.xlane.xlu0 %473 }
 0x398   :  { %2363 = vpow2.f32 %v481_v22  ;;  %v483_v26 = vmul.f32 1.442695, %v478_v23  ;;  %v479_v27 = vsub.f32 %v467_v17, %v474_v24 }
 0x399   :  { %v476_v28 = vpop.xlane.xlu1 %475 }
 0x39a   :  { %2365 = vpow2.f32 %v483_v26  ;;  %v485_v29 = vmul.f32 1.442695, %v479_v27  ;;  %v480_v30 = vsub.f32 %v468_v18, %v476_v28 }
 0x39c   :  { %2367 = vpow2.f32 %v485_v29  ;;  %v487_v25 = vmul.f32 1.442695, %v480_v30 }
 0x39e   :  { %2369 = vpow2.f32 %v487_v25 }
 0x3a2   :  { %v2364_v31 = vpop.eup %2363 }
 0x3a3   :  { %489 = vadd.xlane.f32.xlu0 %v2364_v31 }
 0x3a4   :  { %v2366_v32 = vpop.eup %2365 }
 0x3a5   :  { %491 = vadd.xlane.f32.xlu1 %v2366_v32 }
 0x3a6   :  { %v2368_v33 = vpop.eup %2367 }
 0x3a7   :  { %493 = vadd.xlane.f32.xlu0 %v2368_v33 }
 0x3a8   :  { %v2370_v34 = vpop.eup %2369 }
 0x3a9   :  { %495 = vadd.xlane.f32.xlu1 %v2370_v34 }
 0x430   :  { %v490_v36 = vpop.xlane.xlu0 %489 }
 0x431   :  { %2371 = vrcp.f32 %v490_v36  ;;  %v2294_v36 = vld [vmem:[%s3025_s4 + $0x18] sm:$0xff]  }
 0x432   :  { %v492_v37 = vpop.xlane.xlu1 %491 }
 0x433   :  { %2373 = vrcp.f32 %v492_v37  ;;  %v2295_v37 = vld [vmem:[%s3025_s4 + $0x20] sm:$0xff]  }
 0x434   :  { %v494_v38 = vpop.xlane.xlu0 %493 }
 0x435   :  { %2375 = vrcp.f32 %v494_v38  ;;  %v2296_v38 = vld [vmem:[%s3025_s4 + $0x28] sm:$0xff]  }
 0x436   :  { %v496_v39 = vpop.xlane.xlu1 %495 }
 0x437   :  { %2377 = vrcp.f32 %v496_v39  ;;  %v2297_v39 = vld [vmem:[%s3025_s4 + $0x30] sm:$0xff]  }
 0x43b   :  { %v2372_v40 = vpop.eup %2371 }
 0x43c   :  { %v501_v41 = vmul.f32 %v2372_v40, %v2364_v31  ;;  %v2298_v40 = vld [vmem:[%s3025_s4 + $0x38] sm:$0xff]  }
 0x43d   :  { %v2374_v42 = vpop.eup %2373 }
 0x43e   :  { %v502_v43 = vmul.f32 %v2374_v42, %v2366_v32  ;;  %505 = vst [vmem:[%s3024_s7] sm:$0xff] %v501_v41 }
 0x43f   :  { %v2376_v44 = vpop.eup %2375 }
 0x440   :  { %506 = vst [vmem:[%s3024_s7 + $0x8] sm:$0xff] %v502_v43  ;;  %v509_v45 = vpack.c.bf16 %v502_v43, %v501_v41  ;;  %v503_v46 = vmul.f32 %v2376_v44, %v2368_v33 }
 0x441   :  { %v2378_v47 = vpop.eup %2377 }
 0x442   :  { %2108 = vmatprep.mubr.bf16.mxu1 %v509_v45  ;;  %v504_v48 = vmul.f32 %v2378_v47, %v2370_v34  ;;  %507 = vst [vmem:[%s3024_s7 + $0x10] sm:$0xff] %v503_v46  ;;  %v2292_v34 = vld [vmem:[%s3025_s4 + $0x8] sm:$0xff]  }
 0x444   :  { %508 = vst [vmem:[%s3024_s7 + $0x18] sm:$0xff] %v504_v48  ;;  %v510_v49 = vpack.c.bf16 %v504_v48, %v503_v46 }
 0x446   :  { %2109 = vmatmul.mubr.bf16.vlgmr.msra.gmra.mrb[8].mxu1 %v510_v49 }
 0x447   :  { %2113 = vmatpush3.bf16.msra.mxu1 %v2283_v35  ;;  %v2293_v35 = vld [vmem:[%s3025_s4 + $0x10] sm:$0xff]  }
 0x448   :  { %2114 = vmatprep.subr.bf16.mxu1 %v2284_v50 }
 0x44b   :  { %2115 = vmatpush3.bf16.msra.mxu1 %v2284_v50 }
 0x44c   :  { %2116 = vmatprep.subr.bf16.mxu1 %v2285_v52 }
 0x44f   :  { %2117 = vmatpush3.bf16.msra.mxu1 %v2285_v52 }
 0x450   :  { %2118 = vmatprep.subr.bf16.mxu1 %v2286_v53 }
 0x453   :  { %2119 = vmatpush3.bf16.msra.mxu1 %v2286_v53 }
 0x454   :  { %2120 = vmatprep.subr.bf16.mxu1 %v2287_v54 }
 0x457   :  { %2121 = vmatpush3.bf16.msra.mxu1 %v2287_v54 }
 0x458   :  { %2122 = vmatprep.subr.bf16.mxu1 %v2288_v55 }
 0x45b   :  { %2123 = vmatpush3.bf16.msra.mxu1 %v2288_v55  ;;  %v1854_v55 = vld [vmem:[%s3022_s1 + $0x4] ss:$0 sm:$0xff] }
 0x45c   :  { %2124 = vmatprep.subr.bf16.mxu1 %v2289_v56 }
 0x45f   :  { %2125 = vmatpush3.bf16.msra.mxu1 %v2289_v56 }
 0x460   :  { %2126 = vmatprep.subr.bf16.mxu1 %v2290_v57 }
 0x463   :  { %2127 = vmatpush3.bf16.msra.mxu1 %v2290_v57 }
 0x519   :  { %v2110_v58 = vpop.f32.mrb[8].mxu1 }
 0x51a   :  { %v545_v59 = vpop.f32.mrb[9].mxu1 }
 0x51b   :  { %v2111_v60 = vpop.f32.mrb[10].mxu1 }
 0x51c   :  { %v577_v61 = vpack.c.bf16 %v2111_v60, %v2110_v58  ;;  %v548_v62 = vpop.f32.mrb[11].mxu1 }
 0x51d   :  { %v576_v0 = vpack.c.bf16 %v548_v62, %v545_v59 }
 0x51f   :  { %2128 = vmatprep.mubr.bf16.mxu1 %v576_v0 }
 0x520   :  { %2129 = vmatmul.mubr.bf16.vlgmr.msra.gmra.mrb[12].mxu1 %v577_v61  ;;  %v1855_v61 = vld [vmem:[%s3022_s1 + $0x6] ss:$0 sm:$0xff] }
 0x521   :  { %1127 = vmatprep.mubr.bf16.mxu1 %v2419_v51 }
 0x5f3   :  { %v2130_v3 = vpop.f32.mrb[12].mxu1 }
 0x5f4   :  { %v665_v4 = vpop.f32.mrb[13].mxu1  ;;  %v674_v10 = vadd.f32 %v2130_v3, %v1845_v2 }
 0x5f5   :  { %v666_v6 = vadd.f32 %v1845_v2, %v665_v4  ;;  %v2131_v8 = vpop.f32.mrb[14].mxu1 }
 0x5f6   :  { %v668_v9 = vpop.f32.mrb[15].mxu1  ;;  %v677_v17 = vadd.f32 %v2131_v8, %v1845_v2  ;;  %v2691_v19 = vadd.f32 %v674_v10, %v2488_v12 }
 0x5f7   :  { %v2684_v13 = vadd.f32 %v666_v6, %v2486_v11  ;;  %v669_v16 = vadd.f32 %v1845_v2, %v668_v9  ;;  %v2291_v11 = vld [vmem:[%s3025_s4] sm:$0xff]  }
 0x5f8   :  { %v2695_v20 = vadd.f32 %v677_v17, %v2494_v15  ;;  %2132 = vmatprep.subr.bf16.mxu0 %v2291_v11 }
 0x5f9   :  { %v2687_v18 = vadd.f32 %v669_v16, %v2492_v14  ;;  %686 = vadd.xlane.f32.xlu0 %v2684_v13  ;;  %2133 = vmatpush3.bf16.msra.mxu0 %v2291_v11 }
 0x5fa   :  { %2134 = vmatprep.subr.bf16.mxu0 %v2292_v34 }
 0x5fb   :  { %688 = vadd.xlane.f32.xlu1 %v2687_v18 }
 0x5fd   :  { %690 = vadd.xlane.f32.xlu0 %v2691_v19  ;;  %2135 = vmatpush3.bf16.msra.mxu0 %v2292_v34 }
 0x5fe   :  { %2136 = vmatprep.subr.bf16.mxu0 %v2293_v35 }
 0x5ff   :  { %692 = vadd.xlane.f32.xlu1 %v2695_v20 }
 0x601   :  { %2137 = vmatpush3.bf16.msra.mxu0 %v2293_v35 }
 0x602   :  { %2138 = vmatprep.subr.bf16.mxu0 %v2294_v36 }
 0x605   :  { %2139 = vmatpush3.bf16.msra.mxu0 %v2294_v36 }
 0x606   :  { %2140 = vmatprep.subr.bf16.mxu0 %v2295_v37 }
 0x609   :  { %2141 = vmatpush3.bf16.msra.mxu0 %v2295_v37 }
 0x60a   :  { %2142 = vmatprep.subr.bf16.mxu0 %v2296_v38 }
 0x60d   :  { %2143 = vmatpush3.bf16.msra.mxu0 %v2296_v38 }
 0x60e   :  { %2144 = vmatprep.subr.bf16.mxu0 %v2297_v39 }
 0x611   :  { %2145 = vmatpush3.bf16.msra.mxu0 %v2297_v39 }
 0x612   :  { %2146 = vmatprep.subr.bf16.mxu0 %v2298_v40 }
 0x615   :  { %2147 = vmatpush3.bf16.msra.mxu0 %v2298_v40 }
 0x686   :  { %v687_v14 = vpop.xlane.xlu0 %686 }
 0x687   :  { %v694_v21 = vmul.f32 0.0078125, %v687_v14  ;;  %v1856_v14 = vld [vmem:[%s3022_s1 + $0xa] ss:$0 sm:$0xff] }
 0x688   :  { %v689_v22 = vpop.xlane.xlu1 %688 }
 0x689   :  { %v698_v12 = vsub.f32 %v2684_v13, %v694_v21  ;;  %v695_v23 = vmul.f32 0.0078125, %v689_v22 }
 0x68a   :  { %v691_v24 = vpop.xlane.xlu0 %690 }
 0x68b   :  { %v699_v15 = vsub.f32 %v2687_v18, %v695_v23  ;;  %v696_v26 = vmul.f32 0.0078125, %v691_v24  ;;  %v702_v27 = vmul.f32 %v698_v12, %v698_v12 }
 0x68c   :  { %v693_v28 = vpop.xlane.xlu1 %692 }
 0x68d   :  { %v700_v29 = vsub.f32 %v2691_v19, %v696_v26  ;;  %v697_v30 = vmul.f32 0.0078125, %v693_v28  ;;  %706 = vadd.xlane.f32.xlu0 %v702_v27  ;;  %v703_v25 = vmul.f32 %v699_v15, %v699_v15 }
 0x68f   :  { %v701_v31 = vsub.f32 %v2695_v20, %v697_v30  ;;  %708 = vadd.xlane.f32.xlu1 %v703_v25  ;;  %v704_v32 = vmul.f32 %v700_v29, %v700_v29 }
 0x691   :  { %710 = vadd.xlane.f32.xlu0 %v704_v32  ;;  %v705_v33 = vmul.f32 %v701_v31, %v701_v31 }
 0x693   :  { %712 = vadd.xlane.f32.xlu1 %v705_v33 }
 0x71a   :  { %v707_v41 = vpop.xlane.xlu0 %706 }
 0x71b   :  { %v714_v42 = vmul.f32 0.0078125, %v707_v41 }
 0x71c   :  { %v709_v43 = vpop.xlane.xlu1 %708 }
 0x71d   :  { %v718_v44 = vadd.f32 1e-05, %v714_v42  ;;  %v715_v45 = vmul.f32 0.0078125, %v709_v43 }
 0x71e   :  { %v711_v46 = vpop.xlane.xlu0 %710 }
 0x71f   :  { %2379 = vrsqrt.f32 %v718_v44  ;;  %v719_v47 = vadd.f32 1e-05, %v715_v45  ;;  %v716_v48 = vmul.f32 0.0078125, %v711_v46 }
 0x720   :  { %v713_v49 = vpop.xlane.xlu1 %712 }
 0x721   :  { %2381 = vrsqrt.f32 %v719_v47  ;;  %v720_v50 = vadd.f32 1e-05, %v716_v48  ;;  %v717_v52 = vmul.f32 0.0078125, %v713_v49  ;;  %v2308_v48 = vld [vmem:[%s3021_s2 + $0xf4] ss:$12 sps:$4 sm:$0xff]  }
 0x722   :  { %v2309_v49 = vld [vmem:[%s3021_s2 + $0xe0] ss:$12 sps:$4 sm:$0xff]  }
 0x723   :  { %2383 = vrsqrt.f32 %v720_v50  ;;  %v721_v53 = vadd.f32 1e-05, %v717_v52  ;;  %v2306_v50 = vld [vmem:[%s3021_s2 + $0xf0] ss:$12 sps:$4 sm:$0xff]   ;;  %v2312_v52 = vld [vmem:[%s3021_s2 + $0x10c] ss:$12 sps:$4 sm:$0xff]  }
 0x725   :  { %2385 = vrsqrt.f32 %v721_v53  ;;  %v2313_v53 = vld [vmem:[%s3021_s2 + $0xf8] ss:$12 sps:$4 sm:$0xff]  }
 0x729   :  { %v2380_v54 = vpop.eup %2379 }
 0x72a   :  { %v726_v56 = vmul.f32 %v2380_v54, %v698_v12  ;;  %v2310_v54 = vld [vmem:[%s3021_s2 + $0x108] ss:$12 sps:$4 sm:$0xff]  }
 0x72b   :  { %v2382_v57 = vpop.eup %2381 }
 0x72c   :  { %v727_v58 = vmul.f32 %v2382_v57, %v699_v15  ;;  %v734_v59 = vmul.f32 %v1854_v55, %v726_v56  ;;  %v2317_v56 = vld [vmem:[%s3021_s2 + $0x110] ss:$12 sps:$4 sm:$0xff]   ;;  %v2314_v57 = vld [vmem:[%s3021_s2 + $0x120] ss:$12 sps:$4 sm:$0xff]  }
 0x72d   :  { %v2384_v60 = vpop.eup %2383 }
 0x72e   :  { %v728_v62 = vmul.f32 %v2384_v60, %v700_v29  ;;  %v735_v0 = vmul.f32 %v1854_v55, %v727_v58  ;;  %v742_v4 = vadd.f32 %v1855_v61, %v734_v59  ;;  %v2320_v58 = vld [vmem:[%s3021_s2 + $0x13c] ss:$12 sps:$4 sm:$0xff]   ;;  %v2318_v60 = vld [vmem:[%s3021_s2 + $0x138] ss:$12 sps:$4 sm:$0xff]  }
 0x72f   :  { %v2386_v2 = vpop.eup %2385  ;;  %v2321_v59 = vld [vmem:[%s3021_s2 + $0x128] ss:$12 sps:$4 sm:$0xff]  }
 0x730   :  { %v729_v3 = vmul.f32 %v2386_v2, %v701_v31  ;;  %v743_v6 = vadd.f32 %v1855_v61, %v735_v0  ;;  %v736_v8 = vmul.f32 %v1854_v55, %v728_v62  ;;  %v2302_v31 = vld [vmem:[%s3021_s2 + $0xd8] ss:$12 sps:$4 sm:$0xff]   ;;  %v2325_v62 = vld [vmem:[%s3021_s2 + $0x140] ss:$12 sps:$4 sm:$0xff]   ;;  %v2322_v0 = vld [vmem:[%s3021_s2 + $0x150] ss:$12 sps:$4 sm:$0xff]  }
 0x731   :  { %v2328_v2 = vld [vmem:[%s3021_s2 + $0x16c] ss:$12 sps:$4 sm:$0xff]  }
 0x732   :  { %v762_v9 = vpack.c.bf16 %v743_v6, %v742_v4  ;;  %v737_v10 = vmul.f32 %v1854_v55, %v729_v3  ;;  %v744_v16 = vadd.f32 %v1855_v61, %v736_v8  ;;  %v2316_v55 = vld [vmem:[%s3021_s2 + $0x124] ss:$12 sps:$4 sm:$0xff]   ;;  %v2326_v4 = vld [vmem:[%s3021_s2 + $0x168] ss:$12 sps:$4 sm:$0xff]  }
 0x733   :  { %v2329_v3 = vld [vmem:[%s3021_s2 + $0x158] ss:$12 sps:$4 sm:$0xff]   ;;  %v2330_v6 = vld [vmem:[%s3021_s2 + $0x170] ss:$12 sps:$4 sm:$0xff]  }
 0x734   :  { %2148 = vmatprep.mubr.bf16.mxu0 %v762_v9  ;;  %v745_v17 = vadd.f32 %v1855_v61, %v737_v10  ;;  %v2324_v61 = vld [vmem:[%s3021_s2 + $0x154] ss:$12 sps:$4 sm:$0xff]  }
 0x736   :  { %v763_v11 = vpack.c.bf16 %v745_v17, %v744_v16 }
 0x738   :  { %2149 = vmatmul.mubr.bf16.vlgmr.msra.gmra.mrb[8].mxu0 %v763_v11 }
 0x80b   :  { %v2150_v21 = vpop.f32.mrb[8].mxu0 }
 0x80c   :  { %v851_v22 = vpop.f32.mrb[9].mxu0  ;;  %v860_v15 = vadd.f32 %v2150_v21, %v1856_v14 }
 0x80d   :  { %v852_v12 = vadd.f32 %v1856_v14, %v851_v22  ;;  %v2151_v23 = vpop.f32.mrb[10].mxu0 }
 0x80e   :  { %v854_v24 = vpop.f32.mrb[11].mxu0  ;;  %v863_v28 = vadd.f32 %v2151_v23, %v1856_v14  ;;  %v2744_v30 = vadd.f32 %v860_v15, %v2691_v19  ;;  %v2304_v19 = vld [vmem:[%s3021_s2 + $0xdc] ss:$12 sps:$4 sm:$0xff]  }
 0x80f   :  { %v2737_v26 = vadd.f32 %v852_v12, %v2684_v13  ;;  %v855_v27 = vadd.f32 %v1856_v14, %v854_v24  ;;  %v2299_v13 = vld [vmem:[%s3021_s2 + $0xc0] ss:$12 sps:$4 sm:$0xff]  }
 0x810   :  { %v2748_v25 = vadd.f32 %v863_v28, %v2695_v20  ;;  %v2305_v20 = vld [vmem:[%s3021_s2 + $0xc8] ss:$12 sps:$4 sm:$0xff]  }
 0x811   :  { %v2740_v29 = vadd.f32 %v855_v27, %v2687_v18  ;;  %872 = vadd.xlane.f32.xlu0 %v2737_v26  ;;  %v2301_v18 = vld [vmem:[%s3021_s2 + $0xc4] ss:$12 sps:$4 sm:$0xff]   ;;  %2152 = vmatprep.subr.bf16.mxu0 %v2305_v20  ;;  %v1865_v27 = vld [vmem:[%s3022_s1 + $0x1] ss:$0 sm:$0xff] }
 0x812   :  { %1095 = vmatprep.subr.bf16.mxu1 %v2301_v18  ;;  %2153 = vmatpush3.bf16.msra.mxu0 %v2305_v20 }
 0x813   :  { %874 = vadd.xlane.f32.xlu1 %v2740_v29  ;;  %1096 = vmatpush1.bf16.msra.mxu1 %v2299_v13 }
 0x814   :  { %1097 = vmatprep.subr.bf16.mxu1 %v2304_v19  ;;  %2154 = vmatprep.subr.bf16.mxu0 %v2309_v49 }
 0x815   :  { %876 = vadd.xlane.f32.xlu0 %v2744_v30 }
 0x816   :  { %2155 = vmatpush3.bf16.msra.mxu0 %v2309_v49 }
 0x817   :  { %878 = vadd.xlane.f32.xlu1 %v2748_v25  ;;  %1098 = vmatpush1.bf16.msra.mxu1 %v2302_v31  ;;  %v1866_v31 = vld [vmem:[%s3022_s1 + $0x3] ss:$0 sm:$0xff] }
 0x818   :  { %1099 = vmatprep.subr.bf16.mxu1 %v2308_v48  ;;  %2156 = vmatprep.subr.bf16.mxu0 %v2313_v53 }
 0x81a   :  { %2157 = vmatpush3.bf16.msra.mxu0 %v2313_v53 }
 0x81b   :  { %1100 = vmatpush1.bf16.msra.mxu1 %v2306_v50  ;;  %2158 = vmatprep.subr.bf16.mxu0 %v2317_v56 }
 0x81c   :  { %1101 = vmatprep.subr.bf16.mxu1 %v2312_v52 }
 0x81e   :  { %2159 = vmatpush3.bf16.msra.mxu0 %v2317_v56 }
 0x81f   :  { %1102 = vmatpush1.bf16.msra.mxu1 %v2310_v54  ;;  %2160 = vmatprep.subr.bf16.mxu0 %v2321_v59 }
 0x820   :  { %1103 = vmatprep.subr.bf16.mxu1 %v2316_v55  ;;  %v1925_v55 = vld [vmem:[%s3022_s1 + $0x12] ss:$0 sm:$0xff] }
 0x822   :  { %2161 = vmatpush3.bf16.msra.mxu0 %v2321_v59 }
 0x823   :  { %1104 = vmatpush1.bf16.msra.mxu1 %v2314_v57  ;;  %2162 = vmatprep.subr.bf16.mxu0 %v2325_v62 }
 0x824   :  { %1105 = vmatprep.subr.bf16.mxu1 %v2320_v58 }
 0x826   :  { %2163 = vmatpush3.bf16.msra.mxu0 %v2325_v62 }
 0x827   :  { %1106 = vmatpush1.bf16.msra.mxu1 %v2318_v60  ;;  %2164 = vmatprep.subr.bf16.mxu0 %v2329_v3 }
 0x828   :  { %1107 = vmatprep.subr.bf16.mxu1 %v2324_v61 }
 0x82a   :  { %2165 = vmatpush3.bf16.msra.mxu0 %v2329_v3 }
 0x82b   :  { %1108 = vmatpush1.bf16.msra.mxu1 %v2322_v0  ;;  %2166 = vmatprep.subr.bf16.mxu0 %v2330_v6 }
 0x82c   :  { %1109 = vmatprep.subr.bf16.mxu1 %v2328_v2 }
 0x82e   :  { %2167 = vmatpush3.bf16.msra.mxu0 %v2330_v6 }
 0x82f   :  { %1110 = vmatpush1.bf16.msra.mxu1 %v2326_v4 }
 0x89e   :  { %v873_v32 = vpop.xlane.xlu0 %872 }
 0x89f   :  { %v880_v33 = vmul.f32 0.0078125, %v873_v32 }
 0x8a0   :  { %v875_v34 = vpop.xlane.xlu1 %874 }
 0x8a1   :  { %v2768_v35 = vsub.f32 %v2737_v26, %v880_v33  ;;  %v881_v36 = vmul.f32 0.0078125, %v875_v34 }
 0x8a2   :  { %v877_v37 = vpop.xlane.xlu0 %876 }
 0x8a3   :  { %v2771_v38 = vsub.f32 %v2740_v29, %v881_v36  ;;  %v882_v39 = vmul.f32 0.0078125, %v877_v37  ;;  %v888_v40 = vmul.f32 %v2768_v35, %v2768_v35 }
 0x8a4   :  { %v879_v41 = vpop.xlane.xlu1 %878 }
 0x8a5   :  { %v2776_v42 = vsub.f32 %v2744_v30, %v882_v39  ;;  %v883_v43 = vmul.f32 0.0078125, %v879_v41  ;;  %892 = vadd.xlane.f32.xlu0 %v888_v40  ;;  %v889_v44 = vmul.f32 %v2771_v38, %v2771_v38 }
 0x8a7   :  { %v2781_v45 = vsub.f32 %v2748_v25, %v883_v43  ;;  %894 = vadd.xlane.f32.xlu1 %v889_v44  ;;  %v890_v46 = vmul.f32 %v2776_v42, %v2776_v42 }
 0x8a9   :  { %896 = vadd.xlane.f32.xlu0 %v890_v46  ;;  %v891_v47 = vmul.f32 %v2781_v45, %v2781_v45 }
 0x8ab   :  { %898 = vadd.xlane.f32.xlu1 %v891_v47  ;;  %v1924_v47 = vld [vmem:[%s3022_s1 + $0x11] ss:$0 sm:$0xff] }
 0x932   :  { %v893_v8 = vpop.xlane.xlu0 %892 }
 0x933   :  { %v900_v9 = vmul.f32 0.0078125, %v893_v8 }
 0x934   :  { %v895_v10 = vpop.xlane.xlu1 %894 }
 0x935   :  { %v904_v16 = vadd.f32 1e-05, %v900_v9  ;;  %v901_v17 = vmul.f32 0.0078125, %v895_v10 }
 0x936   :  { %v897_v11 = vpop.xlane.xlu0 %896 }
 0x937   :  { %2387 = vrsqrt.f32 %v904_v16  ;;  %v905_v14 = vadd.f32 1e-05, %v901_v17  ;;  %v902_v21 = vmul.f32 0.0078125, %v897_v11 }
 0x938   :  { %v899_v22 = vpop.xlane.xlu1 %898 }
 0x939   :  { %2389 = vrsqrt.f32 %v905_v14  ;;  %v906_v12 = vadd.f32 1e-05, %v902_v21  ;;  %v903_v23 = vmul.f32 0.0078125, %v899_v22 }
 0x93b   :  { %2391 = vrsqrt.f32 %v906_v12  ;;  %v907_v24 = vadd.f32 1e-05, %v903_v23 }
 0x93d   :  { %2393 = vrsqrt.f32 %v907_v24 }
 0x941   :  { %v2388_v15 = vpop.eup %2387 }
 0x942   :  { %v912_v28 = vmul.f32 %v2388_v15, %v2768_v35 }
 0x943   :  { %v2390_v13 = vpop.eup %2389 }
 0x944   :  { %v913_v18 = vmul.f32 %v2390_v13, %v2771_v38  ;;  %v920_v19 = vmul.f32 %v1865_v27, %v912_v28 }
 0x945   :  { %v2392_v20 = vpop.eup %2391 }
 0x946   :  { %v914_v32 = vmul.f32 %v2392_v20, %v2776_v42  ;;  %v921_v33 = vmul.f32 %v1865_v27, %v913_v18  ;;  %v928_v37 = vadd.f32 %v1866_v31, %v920_v19  ;;  %v1923_v42 = vld [vmem:[%s3022_s1 + $0x10] ss:$0 sm:$0xff] }
 0x947   :  { %v2394_v34 = vpop.eup %2393 }
 0x948   :  { %v915_v36 = vmul.f32 %v2394_v34, %v2781_v45  ;;  %v929_v39 = vadd.f32 %v1866_v31, %v921_v33  ;;  %v922_v40 = vmul.f32 %v1865_v27, %v914_v32 }
 0x94a   :  { %v965_v41 = vpack.c.bf16 %v929_v39, %v928_v37  ;;  %v923_v35 = vmul.f32 %v1865_v27, %v915_v36  ;;  %v930_v38 = vadd.f32 %v1866_v31, %v922_v40 }
 0x94c   :  { %1128 = vmatmul.mubr.bf16.vlgmr.msra.gmra.mrb[16].mxu1 %v965_v41  ;;  %2168 = vmatprep.mubr.bf16.mxu0 %v965_v41  ;;  %v931_v43 = vadd.f32 %v1866_v31, %v923_v35 }
 0x94d   :  { %1137 = vmatprep.mubr.bf16.mxu1 %v2419_v51 }
 0x94e   :  { %v966_v44 = vpack.c.bf16 %v931_v43, %v930_v38 }
 0x950   :  { %2169 = vmatmul.mubr.bf16.vlgmr.msra.gmra.mrb[12].mxu0 %v966_v44 }
 0x954   :  { %1138 = vmatmul.mubr.bf16.gmra.mrb[20].mxu1 %v966_v44 }
 0xa1f   :  { %v1129_v46 = vpop.f32.mrb[16].mxu1 }
 0xa20   :  { %v1131_v45 = vpop.f32.mrb[17].mxu1  ;;  %v1202_v49 = vadd.f32 %v1923_v42, %v1129_v46 }
 0xa21   :  { %v1133_v48 = vpop.f32.mrb[18].mxu1  ;;  %v1211_v53 = vadd.f32 %v1924_v47, %v1131_v45 }
 0xa22   :  { %v1203_v50 = vadd.f32 %v1923_v42, %v1133_v48  ;;  %v1135_v52 = vpop.f32.mrb[19].mxu1 }
 0xa23   :  { %v1212_v54 = vadd.f32 %v1924_v47, %v1135_v52  ;;  %v2170_v51 = vpop.f32.mrb[12].mxu0 }
 0xa24   :  { %v1228_v56 = vpack.c.bf16 %v1203_v50, %v1202_v49  ;;  %v1182_v57 = vpop.f32.mrb[13].mxu0  ;;  %v1222_v60 = vadd.f32 %v2170_v51, %v1925_v55 }
 0xa25   :  { %v1224_v58 = vpack.c.bf16 %v1212_v54, %v1211_v53  ;;  %v2171_v59 = vpop.f32.mrb[14].mxu0  ;;  %v1220_v0 = vadd.f32 %v1925_v55, %v1182_v57 }
 0xa26   :  { %v1223_v61 = vadd.f32 %v2171_v59, %v1925_v55  ;;  %v1185_v62 = vpop.f32.mrb[15].mxu0  ;;  %2176 = vmatprep.mubr.bf16.mxu1 %v1228_v56 }
 0xa27   :  { %v1221_v2 = vadd.f32 %v1925_v55, %v1185_v62  ;;  %v1139_v3 = vpop.f32.mrb[20].mxu1  ;;  %2172 = vmatprep.subr.bf16.mxu1 %v1224_v58  ;;  %v2334_v62 = vld [vmem:[%s3023_s3 + $0x58] sm:$0xff]  }
 0xa28   :  { %v1227_v4 = vpack.c.bf16 %v1223_v61, %v1222_v60  ;;  %v1141_v6 = vpop.f32.mrb[21].mxu1  ;;  %2173 = vmatpush3.bf16.xpose.msra.mxu1 %v1224_v58  ;;  %v1204_v10 = vadd.f32 %v1923_v42, %v1139_v3  ;;  %v2332_v60 = vld [vmem:[%s3023_s3 + $0x48] sm:$0xff]   ;;  %v2333_v61 = vld [vmem:[%s3023_s3 + $0x50] sm:$0xff]  }
 0xa29   :  { %v1226_v8 = vpack.c.bf16 %v1221_v2, %v1220_v0  ;;  %v1143_v9 = vpop.f32.mrb[22].mxu1  ;;  %v1213_v11 = vadd.f32 %v1924_v47, %v1141_v6  ;;  %v2335_v0 = vld [vmem:[%s3023_s3 + $0x60] sm:$0xff]   ;;  %v2336_v2 = vld [vmem:[%s3023_s3 + $0x68] sm:$0xff]   ;;  %v2337_v3 = vld [vmem:[%s3023_s3 + $0x70] sm:$0xff]  }
 0xa2a   :  { %v1205_v16 = vadd.f32 %v1923_v42, %v1143_v9  ;;  %v1145_v17 = vpop.f32.mrb[23].mxu1  ;;  %v2331_v42 = vld [vmem:[%s3023_s3 + $0x40] sm:$0xff]  }
 0xa2b   :  { %v1214_v14 = vadd.f32 %v1924_v47, %v1145_v17  ;;  %2180 = vmatprep.subr.bf16.mxu0 %v1226_v8 }
 0xa2c   :  { %v1229_v21 = vpack.c.bf16 %v1205_v16, %v1204_v10  ;;  %2181 = vmatpush3.bf16.msra.mxu0 %v1226_v8 }
 0xa2d   :  { %v1225_v22 = vpack.c.bf16 %v1214_v14, %v1213_v11  ;;  %2182 = vmatprep.subr.bf16.mxu0 %v1227_v4  ;;  %v1946_v11 = vld [vmem:[%s3022_s1 + $0x9] ss:$0 sm:$0xff] }
 0xa2f   :  { %2174 = vmatprep.subr.bf16.mxu1 %v1225_v22 }
 0xa30   :  { %2175 = vmatpush3.bf16.xpose.msra.mxu1 %v1225_v22  ;;  %2183 = vmatpush3.bf16.msra.mxu0 %v1227_v4  ;;  %v2338_v4 = vld [vmem:[%s3023_s3 + $0x78] sm:$0xff]  }
 0xa31   :  { %2188 = vmatprep.subr.bf16.mxu0 %v2331_v42 }
 0xa37   :  { %2177 = vmatmul.mubr.bf16.vlgmr.msra.gmra.mrb[24].mxu1 %v1229_v21 }
 0xb0a   :  { %v2178_v12 = vpop.f32.mrb[24].mxu1 }
 0xb0b   :  { %v1264_v23 = vpop.f32.mrb[25].mxu1  ;;  %v1281_v28 = vmul.f32 0.088388346, %v2178_v12 }
 0xb0c   :  { %v1279_v24 = vmul.f32 0.088388346, %v1264_v23  ;;  %v2179_v15 = vpop.f32.mrb[26].mxu1 }
 0xb0d   :  { %v1267_v27 = vpop.f32.mrb[27].mxu1  ;;  %v1282_v19 = vmul.f32 0.088388346, %v2179_v15  ;;  %v1285_v31 = vsel %vm50_vm2, -1e+09, %v1281_v28 }
 0xb0e   :  { %v1280_v13 = vmul.f32 0.088388346, %v1267_v27  ;;  %v1283_v18 = vsel %vm48_vm0, -1e+09, %v1279_v24 }
 0xb0f   :  { %1287 = vmax.xlane.f32.xlu0 %v1283_v18  ;;  %v1286_v32 = vsel %vm51_vm3, -1e+09, %v1282_v19 }
 0xb10   :  { %v1284_v20 = vsel %vm49_vm1, -1e+09, %v1280_v13 }
 0xb11   :  { %1289 = vmax.xlane.f32.xlu1 %v1284_v20 }
 0xb13   :  { %1291 = vmax.xlane.f32.xlu0 %v1285_v31 }
 0xb15   :  { %1293 = vmax.xlane.f32.xlu1 %v1286_v32 }
 0xb9c   :  { %v1288_v33 = vpop.xlane.xlu0 %1287 }
 0xb9d   :  { %v1295_v34 = vsub.f32 %v1283_v18, %v1288_v33 }
 0xb9e   :  { %v1290_v36 = vpop.xlane.xlu1 %1289 }
 0xb9f   :  { %v1299_v37 = vmul.f32 1.442695, %v1295_v34  ;;  %v1296_v63 = vsub.f32 %v1284_v20, %v1290_v36 }
 0xba0   :  { %v1292_v39 = vpop.xlane.xlu0 %1291 }
 0xba1   :  { %2395 = vpow2.f32 %v1299_v37  ;;  %v1301_v40 = vmul.f32 1.442695, %v1296_v63  ;;  %v1297_v41 = vsub.f32 %v1285_v31, %v1292_v39 }
 0xba2   :  { %v1294_v1 = vpop.xlane.xlu1 %1293 }
 0xba3   :  { %2397 = vpow2.f32 %v1301_v40  ;;  %v1303_v35 = vmul.f32 1.442695, %v1297_v41  ;;  %v1298_v38 = vsub.f32 %v1286_v32, %v1294_v1 }
 0xba5   :  { %2399 = vpow2.f32 %v1303_v35  ;;  %v1305_v5 = vmul.f32 1.442695, %v1298_v38  ;;  %v2340_v38 = vld [vmem:[%s3025_s4 + $0x48] sm:$0xff]  }
 0xba7   :  { %2401 = vpow2.f32 %v1305_v5  ;;  %v2341_v5 = vld [vmem:[%s3025_s4 + $0x50] sm:$0xff]  }
 0xbab   :  { %v2396_v43 = vpop.eup %2395 }
 0xbac   :  { %1307 = vadd.xlane.f32.xlu0 %v2396_v43 }
 0xbad   :  { %v2398_v7 = vpop.eup %2397 }
 0xbae   :  { %1309 = vadd.xlane.f32.xlu1 %v2398_v7 }
 0xbaf   :  { %v2400_v44 = vpop.eup %2399 }
 0xbb0   :  { %1311 = vadd.xlane.f32.xlu0 %v2400_v44 }
 0xbb1   :  { %v2402_v46 = vpop.eup %2401 }
 0xbb2   :  { %1313 = vadd.xlane.f32.xlu1 %v2402_v46 }
 0xc39   :  { %v1308_v45 = vpop.xlane.xlu0 %1307 }
 0xc3a   :  { %2403 = vrcp.f32 %v1308_v45  ;;  %v2420_v45 = vmov 0.0  }
 0xc3b   :  { %v1310_v47 = vpop.xlane.xlu1 %1309 }
 0xc3c   :  { %2405 = vrcp.f32 %v1310_v47  ;;  %v2347_v47 = vld [vmem:[%s3026_s5] sm:$0xff]  }
 0xc3d   :  { %v1312_v48 = vpop.xlane.xlu0 %1311 }
 0xc3e   :  { %2407 = vrcp.f32 %v1312_v48  ;;  %v2348_v48 = vld [vmem:[%s3026_s5 + $0x8] sm:$0xff]  }
 0xc3f   :  { %v1314_v49 = vpop.xlane.xlu1 %1313 }
 0xc40   :  { %2409 = vrcp.f32 %v1314_v49  ;;  %v2349_v49 = vld [vmem:[%s3026_s5 + $0x10] sm:$0xff]  }
 0xc44   :  { %v2404_v50 = vpop.eup %2403 }
 0xc45   :  { %v1319_v52 = vmul.f32 %v2404_v50, %v2396_v43  ;;  %v2342_v43 = vld [vmem:[%s3025_s4 + $0x58] sm:$0xff]  }
 0xc46   :  { %v2406_v53 = vpop.eup %2405  ;;  %v2350_v50 = vld [vmem:[%s3026_s5 + $0x18] sm:$0xff]  }
 0xc47   :  { %v1320_v54 = vmul.f32 %v2406_v53, %v2398_v7  ;;  %1926 = vst [vmem:[%s3024_s7 + $0x20] sm:$0xff] %v1319_v52  ;;  %v2343_v7 = vld [vmem:[%s3025_s4 + $0x60] sm:$0xff]   ;;  %v2352_v53 = vld [vmem:[%s3026_s5 + $0x28] sm:$0xff]  }
 0xc48   :  { %v2408_v51 = vpop.eup %2407 }
 0xc49   :  { %1927 = vst [vmem:[%s3024_s7 + $0x28] sm:$0xff] %v1320_v54  ;;  %v1328_v55 = vpack.c.bf16 %v1320_v54, %v1319_v52  ;;  %v1321_v56 = vmul.f32 %v2408_v51, %v2400_v44  ;;  %v2344_v44 = vld [vmem:[%s3025_s4 + $0x68] sm:$0xff]   ;;  %v2351_v52 = vld [vmem:[%s3026_s5 + $0x20] sm:$0xff]  }
 0xc4a   :  { %v2410_v57 = vpop.eup %2409 }
 0xc4b   :  { %2184 = vmatprep.mubr.bf16.mxu0 %v1328_v55  ;;  %v1322_v58 = vmul.f32 %v2410_v57, %v2402_v46  ;;  %1928 = vst [vmem:[%s3024_s7 + $0x30] sm:$0xff] %v1321_v56  ;;  %v2345_v46 = vld [vmem:[%s3025_s4 + $0x70] sm:$0xff]  }
 0xc4d   :  { %1929 = vst [vmem:[%s3024_s7 + $0x38] sm:$0xff] %v1322_v58  ;;  %v1329_v59 = vpack.c.bf16 %v1322_v58, %v1321_v56 }
 0xc4f   :  { %2185 = vmatmul.mubr.bf16.vlgmr.msra.gmra.mrb[16].mxu0 %v1329_v59 }
 0xc50   :  { %2189 = vmatpush3.bf16.msra.mxu0 %v2331_v42  ;;  %v2346_v42 = vld [vmem:[%s3025_s4 + $0x78] sm:$0xff]  }
 0xc51   :  { %2190 = vmatprep.subr.bf16.mxu0 %v2332_v60 }
 0xc54   :  { %2191 = vmatpush3.bf16.msra.mxu0 %v2332_v60 }
 0xc55   :  { %2192 = vmatprep.subr.bf16.mxu0 %v2333_v61 }
 0xc58   :  { %2193 = vmatpush3.bf16.msra.mxu0 %v2333_v61 }
 0xc59   :  { %2194 = vmatprep.subr.bf16.mxu0 %v2334_v62 }
 0xc5c   :  { %2195 = vmatpush3.bf16.msra.mxu0 %v2334_v62 }
 0xc5d   :  { %2196 = vmatprep.subr.bf16.mxu0 %v2335_v0 }
 0xc60   :  { %2197 = vmatpush3.bf16.msra.mxu0 %v2335_v0 }
 0xc61   :  { %2198 = vmatprep.subr.bf16.mxu0 %v2336_v2 }
 0xc64   :  { %2199 = vmatpush3.bf16.msra.mxu0 %v2336_v2 }
 0xc65   :  { %2200 = vmatprep.subr.bf16.mxu0 %v2337_v3 }
 0xc68   :  { %2201 = vmatpush3.bf16.msra.mxu0 %v2337_v3 }
 0xc69   :  { %2202 = vmatprep.subr.bf16.mxu0 %v2338_v4 }
 0xc6c   :  { %2203 = vmatpush3.bf16.msra.mxu0 %v2338_v4  ;;  %v1955_v4 = vld [vmem:[%s3022_s1 + $0x5] ss:$0 sm:$0xff] }
 0xc6d   :  { %2228 = vmatprep.subr.bf16.mxu0 %v2420_v45 }
 0xd22   :  { %v2186_v6 = vpop.f32.mrb[16].mxu0 }
 0xd23   :  { %v1364_v8 = vpop.f32.mrb[17].mxu0 }
 0xd24   :  { %v2187_v9 = vpop.f32.mrb[18].mxu0 }
 0xd25   :  { %v1397_v10 = vpack.c.bf16 %v2187_v9, %v2186_v6  ;;  %v1367_v16 = vpop.f32.mrb[19].mxu0 }
 0xd26   :  { %v1396_v17 = vpack.c.bf16 %v1367_v16, %v1364_v8 }
 0xd28   :  { %2204 = vmatprep.mubr.bf16.mxu0 %v1396_v17  ;;  %v1956_v17 = vld [vmem:[%s3022_s1 + $0x7] ss:$0 sm:$0xff] }
 0xd29   :  { %2205 = vmatmul.mubr.bf16.vlgmr.msra.gmra.mrb[20].mxu0 %v1397_v10 }
 0xd2a   :  { %2229 = vmatpush3.bf16.msra.mxu0 %v2347_v47  ;;  %2244 = vmatprep.mubr.msk.bf16.mxu0 %vm2421_vm4, %v2420_v45 }
 0xd2b   :  { %2230 = vmatprep.subr.bf16.mxu0 %v2420_v45 }
 0xd2e   :  { %2231 = vmatpush3.bf16.msra.mxu0 %v2348_v48 }
 0xd2f   :  { %2232 = vmatprep.subr.bf16.mxu0 %v2420_v45 }
 0xd32   :  { %2233 = vmatpush3.bf16.msra.mxu0 %v2349_v49 }
 0xd33   :  { %2234 = vmatprep.subr.bf16.mxu0 %v2420_v45 }
 0xd36   :  { %2235 = vmatpush3.bf16.msra.mxu0 %v2350_v50 }
 0xd37   :  { %2236 = vmatprep.subr.bf16.mxu0 %v2420_v45 }
 0xd3a   :  { %2237 = vmatpush3.bf16.msra.mxu0 %v2351_v52 }
 0xd3b   :  { %2238 = vmatprep.subr.bf16.mxu0 %v2420_v45 }
 0xd3e   :  { %2239 = vmatpush3.bf16.msra.mxu0 %v2352_v53 }
 0xd3f   :  { %2240 = vmatprep.subr.bf16.mxu0 %v2420_v45 }
 0xdfc   :  { %v2206_v14 = vpop.f32.mrb[20].mxu0 }
 0xdfd   :  { %v1485_v21 = vpop.f32.mrb[21].mxu0  ;;  %v1494_v24 = vadd.f32 %v2206_v14, %v1946_v11 }
 0xdfe   :  { %v1486_v22 = vadd.f32 %v1946_v11, %v1485_v21  ;;  %v2207_v12 = vpop.f32.mrb[22].mxu0 }
 0xdff   :  { %v1488_v23 = vpop.f32.mrb[23].mxu0  ;;  %v1497_v28 = vadd.f32 %v2207_v12, %v1946_v11  ;;  %v2917_v18 = vadd.f32 %v1494_v24, %v2744_v30 }
 0xe00   :  { %v2912_v15 = vadd.f32 %v1486_v22, %v2737_v26  ;;  %v1489_v27 = vadd.f32 %v1946_v11, %v1488_v23  ;;  %v2339_v26 = vld [vmem:[%s3025_s4 + $0x40] sm:$0xff]  }
 0xe01   :  { %v1503_v19 = vadd.f32 %v1497_v28, %v2748_v25  ;;  %2208 = vmatprep.subr.bf16.mxu1 %v2339_v26 }
 0xe02   :  { %1506 = vadd.xlane.f32.xlu0 %v2912_v15  ;;  %v1501_v13 = vadd.f32 %v1489_v27, %v2740_v29  ;;  %2209 = vmatpush3.bf16.msra.mxu1 %v2339_v26 }
 0xe03   :  { %2210 = vmatprep.subr.bf16.mxu1 %v2340_v38 }
 0xe04   :  { %1508 = vadd.xlane.f32.xlu1 %v1501_v13 }
 0xe06   :  { %1510 = vadd.xlane.f32.xlu0 %v2917_v18  ;;  %2211 = vmatpush3.bf16.msra.mxu1 %v2340_v38 }
 0xe07   :  { %2212 = vmatprep.subr.bf16.mxu1 %v2341_v5 }
 0xe08   :  { %1512 = vadd.xlane.f32.xlu1 %v1503_v19 }
 0xe0a   :  { %2213 = vmatpush3.bf16.msra.mxu1 %v2341_v5 }
 0xe0b   :  { %2214 = vmatprep.subr.bf16.mxu1 %v2342_v43 }
 0xe0e   :  { %2215 = vmatpush3.bf16.msra.mxu1 %v2342_v43 }
 0xe0f   :  { %2216 = vmatprep.subr.bf16.mxu1 %v2343_v7 }
 0xe12   :  { %2217 = vmatpush3.bf16.msra.mxu1 %v2343_v7 }
 0xe13   :  { %2218 = vmatprep.subr.bf16.mxu1 %v2344_v44 }
 0xe16   :  { %2219 = vmatpush3.bf16.msra.mxu1 %v2344_v44 }
 0xe17   :  { %2220 = vmatprep.subr.bf16.mxu1 %v2345_v46 }
 0xe1a   :  { %2221 = vmatpush3.bf16.msra.mxu1 %v2345_v46 }
 0xe1b   :  { %2222 = vmatprep.subr.bf16.mxu1 %v2346_v42 }
 0xe1e   :  { %2223 = vmatpush3.bf16.msra.mxu1 %v2346_v42 }
 0xe8f   :  { %v1507_v20 = vpop.xlane.xlu0 %1506 }
 0xe90   :  { %v1514_v31 = vmul.f32 0.0078125, %v1507_v20  ;;  %v2353_v20 = vld [vmem:[%s3026_s5 + $0x30] sm:$0xff]  }
 0xe91   :  { %v1509_v32 = vpop.xlane.xlu1 %1508  ;;  %2241 = vmatpush3.bf16.msra.mxu0 %v2353_v20 }
 0xe92   :  { %v2925_v29 = vsub.f32 %v2912_v15, %v1514_v31  ;;  %v1515_v30 = vmul.f32 0.0078125, %v1509_v32  ;;  %2242 = vmatprep.subr.bf16.mxu0 %v2420_v45  ;;  %v2354_v31 = vld [vmem:[%s3026_s5 + $0x38] sm:$0xff]   ;;  %v1973_v32 = vld [vmem:[%s3022_s1 + $0xb] ss:$0 sm:$0xff] }
 0xe93   :  { %v1511_v33 = vpop.xlane.xlu0 %1510 }
 0xe94   :  { %v2927_v34 = vsub.f32 %v1501_v13, %v1515_v30  ;;  %v1516_v36 = vmul.f32 0.0078125, %v1511_v33  ;;  %v1522_v25 = vmul.f32 %v2925_v29, %v2925_v29 }
 0xe95   :  { %v1513_v37 = vpop.xlane.xlu1 %1512  ;;  %2243 = vmatpush3.bf16.msra.mxu0 %v2354_v31 }
 0xe96   :  { %v2932_v63 = vsub.f32 %v2917_v18, %v1516_v36  ;;  %v1517_v39 = vmul.f32 0.0078125, %v1513_v37  ;;  %1526 = vadd.xlane.f32.xlu0 %v1522_v25  ;;  %v1523_v40 = vmul.f32 %v2927_v34, %v2927_v34 }
 0xe98   :  { %v2936_v41 = vsub.f32 %v1503_v19, %v1517_v39  ;;  %1528 = vadd.xlane.f32.xlu1 %v1523_v40  ;;  %v1524_v1 = vmul.f32 %v2932_v63, %v2932_v63  ;;  %v1982_v40 = vld [vmem:[%s3022_s1 + $0xc] ss:$0 sm:$0xff] }
 0xe9a   :  { %1530 = vadd.xlane.f32.xlu0 %v1524_v1  ;;  %v1525_v35 = vmul.f32 %v2936_v41, %v2936_v41 }
 0xe9c   :  { %1532 = vadd.xlane.f32.xlu1 %v1525_v35 }
 0xf23   :  { %v1527_v54 = vpop.xlane.xlu0 %1526 }
 0xf24   :  { %v1534_v51 = vmul.f32 0.0078125, %v1527_v54 }
 0xf25   :  { %v1529_v55 = vpop.xlane.xlu1 %1528 }
 0xf26   :  { %v1538_v56 = vadd.f32 1e-05, %v1534_v51  ;;  %v1535_v57 = vmul.f32 0.0078125, %v1529_v55 }
 0xf27   :  { %v1531_v58 = vpop.xlane.xlu0 %1530 }
 0xf28   :  { %2411 = vrsqrt.f32 %v1538_v56  ;;  %v1539_v59 = vadd.f32 1e-05, %v1535_v57  ;;  %v1536_v60 = vmul.f32 0.0078125, %v1531_v58 }
 0xf29   :  { %v1533_v61 = vpop.xlane.xlu1 %1532 }
 0xf2a   :  { %2413 = vrsqrt.f32 %v1539_v59  ;;  %v1540_v62 = vadd.f32 1e-05, %v1536_v60  ;;  %v1537_v0 = vmul.f32 0.0078125, %v1533_v61 }
 0xf2c   :  { %2415 = vrsqrt.f32 %v1540_v62  ;;  %v1541_v2 = vadd.f32 1e-05, %v1537_v0 }
 0xf2e   :  { %2417 = vrsqrt.f32 %v1541_v2 }
 0xf32   :  { %v2412_v3 = vpop.eup %2411 }
 0xf33   :  { %v1546_v6 = vmul.f32 %v2412_v3, %v2925_v29 }
 0xf34   :  { %v2414_v8 = vpop.eup %2413 }
 0xf35   :  { %v1547_v9 = vmul.f32 %v2414_v8, %v2927_v34  ;;  %v1554_v10 = vmul.f32 %v1955_v4, %v1546_v6 }
 0xf36   :  { %v2416_v16 = vpop.eup %2415 }
 0xf37   :  { %v1548_v11 = vmul.f32 %v2416_v16, %v2932_v63  ;;  %v1555_v14 = vmul.f32 %v1955_v4, %v1547_v9  ;;  %v1562_v12 = vadd.f32 %v1956_v17, %v1554_v10 }
 0xf38   :  { %v2418_v21 = vpop.eup %2417 }
 0xf39   :  { %v1549_v22 = vmul.f32 %v2418_v21, %v2936_v41  ;;  %v1563_v23 = vadd.f32 %v1956_v17, %v1555_v14  ;;  %v1556_v24 = vmul.f32 %v1955_v4, %v1548_v11 }
 0xf3b   :  { %v1583_v27 = vpack.c.bf16 %v1563_v23, %v1562_v12  ;;  %v1557_v28 = vmul.f32 %v1955_v4, %v1549_v22  ;;  %v1564_v13 = vadd.f32 %v1956_v17, %v1556_v24 }
 0xf3d   :  { %2224 = vmatprep.mubr.bf16.mxu1 %v1583_v27  ;;  %v1565_v19 = vadd.f32 %v1956_v17, %v1557_v28 }
 0xf3f   :  { %v1584_v26 = vpack.c.bf16 %v1565_v19, %v1564_v13 }
 0xf41   :  { %2225 = vmatmul.mubr.bf16.vlgmr.msra.gmra.mrb[28].mxu1 %v1584_v26 }
0x1014   :  { %v2226_v29 = vpop.f32.mrb[28].mxu1 }
0x1015   :  { %v1680_v30 = vadd.f32 %v2226_v29, %v1973_v32  ;;  %v1672_v33 = vpop.f32.mrb[29].mxu1 }
0x1016   :  { %v1673_v34 = vadd.f32 %v1973_v32, %v1672_v33  ;;  %v2227_v36 = vpop.f32.mrb[30].mxu1 }
0x1017   :  { %v1686_v25 = vadd.f32 %v1680_v30, %v2917_v18  ;;  %v1675_v37 = vpop.f32.mrb[31].mxu1 }
0x1018   :  { %v1685_v63 = vadd.f32 %v1673_v34, %v2912_v15 }
0x101a   :  { %v1703_v39 = vpack.c.bf16 %v1686_v25, %v1685_v63 }
0x101c   :  { %2245 = vmatmul.mubr.bf16.vlgmr.msra.gmra.mrb[24].mxu0 %v1703_v39 }
0x10ef   :  { %v1791_v41 = vpop.f32.mrb[24].mxu0 }
0x10f0   :  { %v1792_v1 = vadd.f32 %v1982_v40, %v1791_v41  ;;  %v2246_v35 = vpop.f32.mrb[25].mxu0 }
0x10f1   :  { %v1794_v38 = vpop.f32.mrb[26].mxu0 }
0x10f2   :  { %1798 = vst [vmem:[%s3027_s6] sm:$0xff] %v1792_v1  ;;  %v1795_v5 = vadd.f32 %v1982_v40, %v1794_v38  ;;  %v2247_v43 = vpop.f32.mrb[27].mxu0 }
0x10f4   :  { %1799 = vst [vmem:[%s3027_s6 + $0x8] sm:$0xff] %v1795_v5 }

</bundles_post_ra>
